<compile_context>
chip_gen: v5e
topology: v5e:2x2
jax: 0.10.0
libtpu: 0.0.40
codegen_flags: <defaults>
</compile_context>

<pallas_src>
import functools
import math

import jax
import jax.numpy as jnp
from jax.experimental import pallas as pl
from jax.experimental.pallas import tpu as pltpu


# ----------------------------------------------------------------------------
# Fused per-batch kernel (one grid step == one batch element)
# ----------------------------------------------------------------------------
def fused_dcm_kernel(
    x_ref,                                   # (1, S, E)
    liw_ref, lib_ref,                        # leg MHA in_proj          (E,3E)/(1,3E)
    wleg_ref, bleg_ref,                      # fold(out_proj+leg_linear)(E,E)/(1,E)
    wpe_ref, bpe_ref,                        # fold(pool_lin+exp in_proj)(E,3E)/(1,3E)
    wem_ref,                                 # fold(exp out_proj+FW_em) (E,E)
    fwx_ref, bfin_ref,                       # final x-half weight/bias (E,E)/(1,E)
    o_ref,                                   # (1, S, E)
    *, S, E, H, P, EXP,
):
    hd = E // H
    scale = 1.0 / math.sqrt(hd)
    k1 = -(-P // EXP)                        # unique top rows needed
    m_last = P - (k1 - 1) * EXP              # multiplicity of the last unique row

    def attend(qkv, key_bias=None):
        # qkv: (seq, 3E).  Per-head self-attention, heads as short static loop.
        outs = []
        for h in range(H):
            q = qkv[:, h * hd:(h + 1) * hd]
            k = qkv[:, E + h * hd:E + (h + 1) * hd]
            v = qkv[:, 2 * E + h * hd:2 * E + (h + 1) * hd]
            s = jax.lax.dot_general(
                q, k, (((1,), (1,)), ((), ())),
                preferred_element_type=jnp.float32) * scale          # (seq, seq)
            if key_bias is not None:
                s = s + key_bias
            m = jnp.max(s, axis=-1, keepdims=True)
            e = jnp.exp(s - m)
            p = e * pl.reciprocal(jnp.sum(e, axis=-1, keepdims=True), approx=True)
            outs.append(jnp.dot(p, v, preferred_element_type=jnp.float32))
        return jnp.concatenate(outs, axis=-1)                        # (seq, E)

    x = x_ref[0]                                                     # (S, E)

    # --- LegIdentificationSubmodule: in_proj -> MHA -> fold(out_proj+leg_linear)
    qkv_l = jnp.dot(x, liw_ref[...], preferred_element_type=jnp.float32) + lib_ref[...]
    attn_l = attend(qkv_l)                                           # (S, E)
    legs = jnp.dot(attn_l, wleg_ref[...],
                   preferred_element_type=jnp.float32) + bleg_ref[...]   # (S, E)

    # --- ContextualEmbeddingPooling: top-k1 unique values per column (descending),
    #     first-occurrence masking so duplicate values are handled like torch.topk.
    row_ids = jax.lax.broadcasted_iota(jnp.int32, (S, E), 0)
    cur = legs
    tops = []
    for _ in range(k1):
        mx = jnp.max(cur, axis=0, keepdims=True)                     # (1, E)
        first = jnp.min(jnp.where(cur == mx, row_ids, S), axis=0, keepdims=True)
        tops.append(mx)
        cur = jnp.where(row_ids == first, -jnp.inf, cur)
    tops = jnp.concatenate(tops, axis=0)                             # (k1, E)

    # --- fold(pool_linear + exploration in_proj), attention on unique rows only.
    qkv_e = jnp.dot(tops, wpe_ref[...],
                    preferred_element_type=jnp.float32) + bpe_ref[...]   # (k1, 3E)
    if m_last != EXP:
        # non-uniform duplication: last unique key has smaller multiplicity
        key_ids = jax.lax.broadcasted_iota(jnp.int32, (1, k1), 1)
        key_bias = jnp.where(key_ids == k1 - 1, math.log(m_last / EXP), 0.0)
    else:
        key_bias = None                       # uniform multiplicity cancels in softmax
    attn_e = attend(qkv_e, key_bias=key_bias)                        # (k1, E)

    # --- multiplicity-weighted mean over the P duplicated rows
    if m_last != EXP:
        rid = jax.lax.broadcasted_iota(jnp.int32, (k1, 1), 0)
        w = jnp.where(rid == k1 - 1, m_last / P, EXP / P)
        em = jnp.sum(attn_e * w, axis=0, keepdims=True)              # (1, E)
    else:
        em = jnp.mean(attn_e, axis=0, keepdims=True)                 # (1, E)

    # --- fold(exploration out_proj into em-half of final linear); no 2E concat.
    row_bias = jnp.dot(em, wem_ref[...],
                       preferred_element_type=jnp.float32) + bfin_ref[...]  # (1, E)
    out = jnp.dot(x, fwx_ref[...], preferred_element_type=jnp.float32) + row_bias
    o_ref[0] = out.astype(o_ref.dtype)


# ----------------------------------------------------------------------------
# Weight pre-packing + offline affine folds (done ONCE, outside the forward)
# ----------------------------------------------------------------------------
def prepack_params(params, E):
    # leg MHA in_proj
    liw = params["leg_attn"]["in_proj_weight"].T                     # (E, 3E)
    lib = params["leg_attn"]["in_proj_bias"].reshape(1, -1)          # (1, 3E)

    # fold (a): leg out_proj + leg_linear
    ow = params["leg_attn"]["out_proj_weight"].T                     # (E, E)
    ob = params["leg_attn"]["out_proj_bias"].reshape(1, -1)
    llw = params["leg_linear"]["weight"].T
    llb = params["leg_linear"]["bias"].reshape(1, -1)
    w_leg = ow @ llw
    b_leg = ob @ llw + llb

    # fold (b): pool_linear + exploration in_proj
    plw = params["pool_linear"]["weight"].T
    plb = params["pool_linear"]["bias"].reshape(1, -1)
    eiw = params["exp_attn"]["in_proj_weight"].T                     # (E, 3E)
    eib = params["exp_attn"]["in_proj_bias"].reshape(1, -1)
    w_pe = plw @ eiw
    b_pe = plb @ eiw + eib

    # fold (c): exploration out_proj folded into the em-half of final linear
    eow = params["exp_attn"]["out_proj_weight"].T
    eob = params["exp_attn"]["out_proj_bias"].reshape(1, -1)
    fw = params["final_linear"]["weight"].T                          # (2E, E)
    fb = params["final_linear"]["bias"].reshape(1, -1)
    fw_x = fw[:E, :]                                                 # x-half
    fw_em = fw[E:, :]                                                # em-half
    w_em = eow @ fw_em
    b_fin = eob @ fw_em + fb

    return (liw, lib, w_leg, b_leg, w_pe, b_pe, w_em, fw_x, b_fin)


# ----------------------------------------------------------------------------
# Forward wrapper: one pallas_call, grid over batch (parallel -> 2 TCs on v7x)
# ----------------------------------------------------------------------------
def divergence_convergence_forward(x, packed, num_heads, pool_size=10,
                                   expansion_factor=2):
    S, B, E = x.shape
    P = min(pool_size, expansion_factor * S)
    xb = x.transpose(1, 0, 2)                                        # (B, S, E)

    kern = functools.partial(fused_dcm_kernel, S=S, E=E, H=num_heads,
                             P=P, EXP=expansion_factor)

    grid_spec = pltpu.PrefetchScalarGridSpec(
        num_scalar_prefetch=0,
        grid=(B,),
        in_specs=[pl.BlockSpec((1, S, E), lambda b: (b, 0, 0))] +
                 [pl.BlockSpec(w.shape, lambda b: (0, 0)) for w in packed],
        out_specs=pl.BlockSpec((1, S, E), lambda b: (b, 0, 0)),
    )

    out3 = pl.pallas_call(
        kern,
        out_shape=jax.ShapeDtypeStruct((B, S, E), jnp.float32),
        grid_spec=grid_spec,
        compiler_params=pltpu.CompilerParams(
            dimension_semantics=("parallel",),
            vmem_limit_bytes=32 * 1024 * 1024),
    )(xb, *packed)

    return out3.transpose(1, 0, 2)                                   # (S, B, E)


# ----------------------------------------------------------------------------
# Pure-JAX reference (torch semantics) for the sanity check
# ----------------------------------------------------------------------------
def ref_mha(x, p, H):
    S, B, E = x.shape
    hd = E // H
    qkv = x @ p["in_proj_weight"].T + p["in_proj_bias"]
    q, k, v = jnp.split(qkv, 3, axis=-1)
    heads = lambda t: t.reshape(S, B, H, hd).transpose(1, 2, 0, 3)
    q, k, v = heads(q), heads(k), heads(v)
    s = jnp.einsum("bhqd,bhkd->bhqk", q, k) / math.sqrt(hd)
    a = jax.nn.softmax(s, axis=-1)
    o = jnp.einsum("bhqk,bhkd->bhqd", a, v).transpose(2, 0, 1, 3).reshape(S, B, E)
    return o @ p["out_proj_weight"].T + p["out_proj_bias"]


def ref_forward(x, params, H, pool_size=10, expansion_factor=2):
    attn = ref_mha(x, params["leg_attn"], H)
    expanded = jnp.concatenate([attn] * expansion_factor, axis=0)
    legs = expanded @ params["leg_linear"]["weight"].T + params["leg_linear"]["bias"]
    P = min(pool_size, legs.shape[0])
    pooled = -jnp.sort(-legs, axis=0)[:P]                  # torch.topk values, dim=0
    pooled = pooled @ params["pool_linear"]["weight"].T + params["pool_linear"]["bias"]
    explored = ref_mha(pooled, params["exp_attn"], H)
    em = explored.mean(0, keepdims=True)
    em_rep = jnp.broadcast_to(em, (x.shape[0],) + em.shape[1:])
    combined = jnp.concatenate([x, em_rep], axis=-1)
    return combined @ params["final_linear"]["weight"].T + params["final_linear"]["bias"]


# ----------------------------------------------------------------------------
# Deterministic parameter init (torch layout)
# ----------------------------------------------------------------------------
def init_params(key, E):
    ks = jax.random.split(key, 16)
    w = lambda k, shape: 0.05 * jax.random.normal(k, shape, jnp.float32)

    def mha_params(k0, k1, k2, k3):
        return {
            "in_proj_weight": w(k0, (3 * E, E)),
            "in_proj_bias": w(k1, (3 * E,)),
            "out_proj_weight": w(k2, (E, E)),
            "out_proj_bias": w(k3, (E,)),
        }

    return {
        "leg_attn": mha_params(ks[0], ks[1], ks[2], ks[3]),
        "leg_linear": {"weight": w(ks[4], (E, E)), "bias": w(ks[5], (E,))},
        "pool_linear": {"weight": w(ks[6], (E, E)), "bias": w(ks[7], (E,))},
        "exp_attn": mha_params(ks[8], ks[9], ks[10], ks[11]),
        "final_linear": {"weight": w(ks[12], (E, 2 * E)), "bias": w(ks[13], (E,))},
    }


# TODO(synk): key_padding_mask path of the MHAs is not exercised (module is run
# with mask=None); torch .to(device) bookkeeping has no JAX equivalent / is a no-op.

if __name__ == "__main__":
    S, B, E, H = 8, 2, 32, 4          # seq, batch, embed, heads (head_dim = 8)
    key = jax.random.PRNGKey(0)
    kx, kp = jax.random.split(key)
    x = jax.random.normal(kx, (S, B, E), jnp.float32)
    params = init_params(kp, E)
    packed = prepack_params(params, E)   # one-time packing + affine folds

    out = divergence_convergence_forward(x, packed, H, pool_size=10)
    out = jax.block_until_ready(out)

    ref = jax.block_until_ready(ref_forward(x, params, H, pool_size=10))
    assert out.shape == (S, B, E)
    assert jnp.allclose(out, ref, atol=2e-2, rtol=2e-2), "mismatch vs reference"

    print("KERNEL_OK")
</pallas_src>

<mosaic_0001>
module attributes {stable_mosaic.version = 11 : i64} {
  func.func @fused_dcm_kernel(%arg0: i32, %arg1: memref<1x8x32xf32, #tpu.memory_space<vmem>>, %arg2: memref<32x96xf32, #tpu.memory_space<vmem>>, %arg3: memref<1x96xf32, #tpu.memory_space<vmem>>, %arg4: memref<32x32xf32, #tpu.memory_space<vmem>>, %arg5: memref<1x32xf32, #tpu.memory_space<vmem>>, %arg6: memref<32x96xf32, #tpu.memory_space<vmem>>, %arg7: memref<1x96xf32, #tpu.memory_space<vmem>>, %arg8: memref<32x32xf32, #tpu.memory_space<vmem>>, %arg9: memref<32x32xf32, #tpu.memory_space<vmem>>, %arg10: memref<1x32xf32, #tpu.memory_space<vmem>>, %arg11: memref<1x8x32xf32, #tpu.memory_space<vmem>>) attributes {dimension_semantics = [#tpu.dimension_semantics<parallel>], iteration_bounds = array<i64: 2>, scalar_prefetch = 0 : i64, scratch_operands = 0 : i64, tpu.core_type = #tpu.core_type<tc>, window_params = [{transform_indices = @transform_0, window_bounds = array<i64: 1, 8, 32>}, {pipeline_mode = #tpu.pipeline_mode<synchronous>, transform_indices = @transform_1, window_bounds = array<i64: 32, 96>}, {pipeline_mode = #tpu.pipeline_mode<synchronous>, transform_indices = @transform_2, window_bounds = array<i64: 1, 96>}, {pipeline_mode = #tpu.pipeline_mode<synchronous>, transform_indices = @transform_3, window_bounds = array<i64: 32, 32>}, {pipeline_mode = #tpu.pipeline_mode<synchronous>, transform_indices = @transform_4, window_bounds = array<i64: 1, 32>}, {pipeline_mode = #tpu.pipeline_mode<synchronous>, transform_indices = @transform_5, window_bounds = array<i64: 32, 96>}, {pipeline_mode = #tpu.pipeline_mode<synchronous>, transform_indices = @transform_6, window_bounds = array<i64: 1, 96>}, {pipeline_mode = #tpu.pipeline_mode<synchronous>, transform_indices = @transform_7, window_bounds = array<i64: 32, 32>}, {pipeline_mode = #tpu.pipeline_mode<synchronous>, transform_indices = @transform_8, window_bounds = array<i64: 32, 32>}, {pipeline_mode = #tpu.pipeline_mode<synchronous>, transform_indices = @transform_9, window_bounds = array<i64: 1, 32>}, {transform_indices = @transform_10, window_bounds = array<i64: 1, 8, 32>}]} {
    %c0 = arith.constant 0 : index
    %c0_0 = arith.constant 0 : index
    %c0_1 = arith.constant 0 : index
    %0 = vector.load %arg1[%c0, %c0_0, %c0_1] : memref<1x8x32xf32, #tpu.memory_space<vmem>>, vector<1x8x32xf32>
    %1 = vector.shape_cast %0 : vector<1x8x32xf32> to vector<8x32xf32>
    %c0_2 = arith.constant 0 : index
    %c0_3 = arith.constant 0 : index
    %2 = vector.load %arg2[%c0_2, %c0_3] : memref<32x96xf32, #tpu.memory_space<vmem>>, vector<32x96xf32>
    %cst = arith.constant dense<0.000000e+00> : vector<8x96xf32>
    %3 = tpu.matmul %1, %2, %cst {dimension_numbers = #tpu.dot_dimension_numbers<[1], [0], [0], [1], [0, 0, 1, 1], [], []>} : vector<8x32xf32>, vector<32x96xf32>, vector<8x96xf32> -> vector<8x96xf32>
    %c0_4 = arith.constant 0 : index
    %c0_5 = arith.constant 0 : index
    %4 = vector.load %arg3[%c0_4, %c0_5] : memref<1x96xf32, #tpu.memory_space<vmem>>, vector<1x96xf32>
    %5 = vector.broadcast %4 : vector<1x96xf32> to vector<8x96xf32>
    %6 = arith.addf %3, %5 : vector<8x96xf32>
    %7 = vector.extract_strided_slice %6 {offsets = [0, 0], sizes = [8, 8], strides = [1, 1]} : vector<8x96xf32> to vector<8x8xf32>
    %8 = vector.extract_strided_slice %6 {offsets = [0, 32], sizes = [8, 8], strides = [1, 1]} : vector<8x96xf32> to vector<8x8xf32>
    %9 = vector.extract_strided_slice %6 {offsets = [0, 64], sizes = [8, 8], strides = [1, 1]} : vector<8x96xf32> to vector<8x8xf32>
    %cst_6 = arith.constant dense<0.000000e+00> : vector<8x8xf32>
    %10 = tpu.matmul %7, %8, %cst_6 {dimension_numbers = #tpu.dot_dimension_numbers<[1], [1], [0], [0], [0, 0, 1, 0], [], []>} : vector<8x8xf32>, vector<8x8xf32>, vector<8x8xf32> -> vector<8x8xf32>
    %cst_7 = arith.constant 0.353553385 : f32
    %11 = vector.broadcast %cst_7 : f32 to vector<8x8xf32>
    %12 = arith.mulf %10, %11 : vector<8x8xf32>
    %cst_8 = arith.constant dense<0xFF800000> : vector<8xf32>
    %13 = vector.multi_reduction <maximumf>, %12, %cst_8 [1] : vector<8x8xf32> to vector<8xf32>
    %14 = vector.shape_cast %13 : vector<8xf32> to vector<8x1xf32>
    %15 = vector.broadcast %14 : vector<8x1xf32> to vector<8x8xf32>
    %16 = arith.subf %12, %15 : vector<8x8xf32>
    %17 = math.exp %16 : vector<8x8xf32>
    %cst_9 = arith.constant dense<0.000000e+00> : vector<8xf32>
    %18 = vector.multi_reduction <add>, %17, %cst_9 [1] : vector<8x8xf32> to vector<8xf32>
    %19 = vector.shape_cast %18 : vector<8xf32> to vector<8x1xf32>
    %20 = tpu.reciprocal %19 {approx = true} : vector<8x1xf32> -> vector<8x1xf32>
    %21 = vector.broadcast %20 : vector<8x1xf32> to vector<8x8xf32>
    %22 = arith.mulf %17, %21 : vector<8x8xf32>
    %cst_10 = arith.constant dense<0.000000e+00> : vector<8x8xf32>
    %23 = tpu.matmul %22, %9, %cst_10 {dimension_numbers = #tpu.dot_dimension_numbers<[1], [0], [0], [1], [0, 0, 1, 1], [], []>} : vector<8x8xf32>, vector<8x8xf32>, vector<8x8xf32> -> vector<8x8xf32>
    %24 = vector.extract_strided_slice %6 {offsets = [0, 8], sizes = [8, 8], strides = [1, 1]} : vector<8x96xf32> to vector<8x8xf32>
    %25 = vector.extract_strided_slice %6 {offsets = [0, 40], sizes = [8, 8], strides = [1, 1]} : vector<8x96xf32> to vector<8x8xf32>
    %26 = vector.extract_strided_slice %6 {offsets = [0, 72], sizes = [8, 8], strides = [1, 1]} : vector<8x96xf32> to vector<8x8xf32>
    %cst_11 = arith.constant dense<0.000000e+00> : vector<8x8xf32>
    %27 = tpu.matmul %24, %25, %cst_11 {dimension_numbers = #tpu.dot_dimension_numbers<[1], [1], [0], [0], [0, 0, 1, 0], [], []>} : vector<8x8xf32>, vector<8x8xf32>, vector<8x8xf32> -> vector<8x8xf32>
    %cst_12 = arith.constant 0.353553385 : f32
    %28 = vector.broadcast %cst_12 : f32 to vector<8x8xf32>
    %29 = arith.mulf %27, %28 : vector<8x8xf32>
    %cst_13 = arith.constant dense<0xFF800000> : vector<8xf32>
    %30 = vector.multi_reduction <maximumf>, %29, %cst_13 [1] : vector<8x8xf32> to vector<8xf32>
    %31 = vector.shape_cast %30 : vector<8xf32> to vector<8x1xf32>
    %32 = vector.broadcast %31 : vector<8x1xf32> to vector<8x8xf32>
    %33 = arith.subf %29, %32 : vector<8x8xf32>
    %34 = math.exp %33 : vector<8x8xf32>
    %cst_14 = arith.constant dense<0.000000e+00> : vector<8xf32>
    %35 = vector.multi_reduction <add>, %34, %cst_14 [1] : vector<8x8xf32> to vector<8xf32>
    %36 = vector.shape_cast %35 : vector<8xf32> to vector<8x1xf32>
    %37 = tpu.reciprocal %36 {approx = true} : vector<8x1xf32> -> vector<8x1xf32>
    %38 = vector.broadcast %37 : vector<8x1xf32> to vector<8x8xf32>
    %39 = arith.mulf %34, %38 : vector<8x8xf32>
    %cst_15 = arith.constant dense<0.000000e+00> : vector<8x8xf32>
    %40 = tpu.matmul %39, %26, %cst_15 {dimension_numbers = #tpu.dot_dimension_numbers<[1], [0], [0], [1], [0, 0, 1, 1], [], []>} : vector<8x8xf32>, vector<8x8xf32>, vector<8x8xf32> -> vector<8x8xf32>
    %41 = vector.extract_strided_slice %6 {offsets = [0, 16], sizes = [8, 8], strides = [1, 1]} : vector<8x96xf32> to vector<8x8xf32>
    %42 = vector.extract_strided_slice %6 {offsets = [0, 48], sizes = [8, 8], strides = [1, 1]} : vector<8x96xf32> to vector<8x8xf32>
    %43 = vector.extract_strided_slice %6 {offsets = [0, 80], sizes = [8, 8], strides = [1, 1]} : vector<8x96xf32> to vector<8x8xf32>
    %cst_16 = arith.constant dense<0.000000e+00> : vector<8x8xf32>
    %44 = tpu.matmul %41, %42, %cst_16 {dimension_numbers = #tpu.dot_dimension_numbers<[1], [1], [0], [0], [0, 0, 1, 0], [], []>} : vector<8x8xf32>, vector<8x8xf32>, vector<8x8xf32> -> vector<8x8xf32>
    %cst_17 = arith.constant 0.353553385 : f32
    %45 = vector.broadcast %cst_17 : f32 to vector<8x8xf32>
    %46 = arith.mulf %44, %45 : vector<8x8xf32>
    %cst_18 = arith.constant dense<0xFF800000> : vector<8xf32>
    %47 = vector.multi_reduction <maximumf>, %46, %cst_18 [1] : vector<8x8xf32> to vector<8xf32>
    %48 = vector.shape_cast %47 : vector<8xf32> to vector<8x1xf32>
    %49 = vector.broadcast %48 : vector<8x1xf32> to vector<8x8xf32>
    %50 = arith.subf %46, %49 : vector<8x8xf32>
    %51 = math.exp %50 : vector<8x8xf32>
    %cst_19 = arith.constant dense<0.000000e+00> : vector<8xf32>
    %52 = vector.multi_reduction <add>, %51, %cst_19 [1] : vector<8x8xf32> to vector<8xf32>
    %53 = vector.shape_cast %52 : vector<8xf32> to vector<8x1xf32>
    %54 = tpu.reciprocal %53 {approx = true} : vector<8x1xf32> -> vector<8x1xf32>
    %55 = vector.broadcast %54 : vector<8x1xf32> to vector<8x8xf32>
    %56 = arith.mulf %51, %55 : vector<8x8xf32>
    %cst_20 = arith.constant dense<0.000000e+00> : vector<8x8xf32>
    %57 = tpu.matmul %56, %43, %cst_20 {dimension_numbers = #tpu.dot_dimension_numbers<[1], [0], [0], [1], [0, 0, 1, 1], [], []>} : vector<8x8xf32>, vector<8x8xf32>, vector<8x8xf32> -> vector<8x8xf32>
    %58 = vector.extract_strided_slice %6 {offsets = [0, 24], sizes = [8, 8], strides = [1, 1]} : vector<8x96xf32> to vector<8x8xf32>
    %59 = vector.extract_strided_slice %6 {offsets = [0, 56], sizes = [8, 8], strides = [1, 1]} : vector<8x96xf32> to vector<8x8xf32>
    %60 = vector.extract_strided_slice %6 {offsets = [0, 88], sizes = [8, 8], strides = [1, 1]} : vector<8x96xf32> to vector<8x8xf32>
    %cst_21 = arith.constant dense<0.000000e+00> : vector<8x8xf32>
    %61 = tpu.matmul %58, %59, %cst_21 {dimension_numbers = #tpu.dot_dimension_numbers<[1], [1], [0], [0], [0, 0, 1, 0], [], []>} : vector<8x8xf32>, vector<8x8xf32>, vector<8x8xf32> -> vector<8x8xf32>
    %cst_22 = arith.constant 0.353553385 : f32
    %62 = vector.broadcast %cst_22 : f32 to vector<8x8xf32>
    %63 = arith.mulf %61, %62 : vector<8x8xf32>
    %cst_23 = arith.constant dense<0xFF800000> : vector<8xf32>
    %64 = vector.multi_reduction <maximumf>, %63, %cst_23 [1] : vector<8x8xf32> to vector<8xf32>
    %65 = vector.shape_cast %64 : vector<8xf32> to vector<8x1xf32>
    %66 = vector.broadcast %65 : vector<8x1xf32> to vector<8x8xf32>
    %67 = arith.subf %63, %66 : vector<8x8xf32>
    %68 = math.exp %67 : vector<8x8xf32>
    %cst_24 = arith.constant dense<0.000000e+00> : vector<8xf32>
    %69 = vector.multi_reduction <add>, %68, %cst_24 [1] : vector<8x8xf32> to vector<8xf32>
    %70 = vector.shape_cast %69 : vector<8xf32> to vector<8x1xf32>
    %71 = tpu.reciprocal %70 {approx = true} : vector<8x1xf32> -> vector<8x1xf32>
    %72 = vector.broadcast %71 : vector<8x1xf32> to vector<8x8xf32>
    %73 = arith.mulf %68, %72 : vector<8x8xf32>
    %cst_25 = arith.constant dense<0.000000e+00> : vector<8x8xf32>
    %74 = tpu.matmul %73, %60, %cst_25 {dimension_numbers = #tpu.dot_dimension_numbers<[1], [0], [0], [1], [0, 0, 1, 1], [], []>} : vector<8x8xf32>, vector<8x8xf32>, vector<8x8xf32> -> vector<8x8xf32>
    %75 = tpu.concatenate %23, %40, %57, %74 in 1 : vector<8x8xf32>, vector<8x8xf32>, vector<8x8xf32>, vector<8x8xf32> -> vector<8x32xf32>
    %c0_26 = arith.constant 0 : index
    %c0_27 = arith.constant 0 : index
    %76 = vector.load %arg4[%c0_26, %c0_27] : memref<32x32xf32, #tpu.memory_space<vmem>>, vector<32x32xf32>
    %cst_28 = arith.constant dense<0.000000e+00> : vector<8x32xf32>
    %77 = tpu.matmul %75, %76, %cst_28 {dimension_numbers = #tpu.dot_dimension_numbers<[1], [0], [0], [1], [0, 0, 1, 1], [], []>} : vector<8x32xf32>, vector<32x32xf32>, vector<8x32xf32> -> vector<8x32xf32>
    %c0_29 = arith.constant 0 : index
    %c0_30 = arith.constant 0 : index
    %78 = vector.load %arg5[%c0_29, %c0_30] : memref<1x32xf32, #tpu.memory_space<vmem>>, vector<1x32xf32>
    %79 = vector.broadcast %78 : vector<1x32xf32> to vector<8x32xf32>
    %80 = arith.addf %77, %79 : vector<8x32xf32>
    %81 = tpu.iota {dimensions = array<i32: 0>} : vector<8x32xi32>
    %cst_31 = arith.constant dense<0xFF800000> : vector<32xf32>
    %82 = vector.multi_reduction <maximumf>, %80, %cst_31 [0] : vector<8x32xf32> to vector<32xf32>
    %83 = vector.shape_cast %82 : vector<32xf32> to vector<1x32xf32>
    %84 = vector.broadcast %83 : vector<1x32xf32> to vector<8x32xf32>
    %85 = arith.cmpf oeq, %80, %84 : vector<8x32xf32>
    %c8_i32 = arith.constant 8 : i32
    %86 = vector.broadcast %c8_i32 : i32 to vector<8x32xi32>
    %87 = arith.select %85, %81, %86 : vector<8x32xi1>, vector<8x32xi32>
    %cst_32 = arith.constant dense<2147483647> : vector<32xi32>
    %88 = vector.multi_reduction <minsi>, %87, %cst_32 [0] : vector<8x32xi32> to vector<32xi32>
    %89 = vector.shape_cast %88 : vector<32xi32> to vector<1x32xi32>
    %90 = vector.broadcast %89 : vector<1x32xi32> to vector<8x32xi32>
    %91 = arith.cmpi eq, %81, %90 : vector<8x32xi32>
    %cst_33 = arith.constant 0xFF800000 : f32
    %92 = vector.broadcast %cst_33 : f32 to vector<8x32xf32>
    %93 = arith.select %91, %92, %80 : vector<8x32xi1>, vector<8x32xf32>
    %cst_34 = arith.constant dense<0xFF800000> : vector<32xf32>
    %94 = vector.multi_reduction <maximumf>, %93, %cst_34 [0] : vector<8x32xf32> to vector<32xf32>
    %95 = vector.shape_cast %94 : vector<32xf32> to vector<1x32xf32>
    %96 = vector.broadcast %95 : vector<1x32xf32> to vector<8x32xf32>
    %97 = arith.cmpf oeq, %93, %96 : vector<8x32xf32>
    %c8_i32_35 = arith.constant 8 : i32
    %98 = vector.broadcast %c8_i32_35 : i32 to vector<8x32xi32>
    %99 = arith.select %97, %81, %98 : vector<8x32xi1>, vector<8x32xi32>
    %cst_36 = arith.constant dense<2147483647> : vector<32xi32>
    %100 = vector.multi_reduction <minsi>, %99, %cst_36 [0] : vector<8x32xi32> to vector<32xi32>
    %101 = vector.shape_cast %100 : vector<32xi32> to vector<1x32xi32>
    %102 = vector.broadcast %101 : vector<1x32xi32> to vector<8x32xi32>
    %103 = arith.cmpi eq, %81, %102 : vector<8x32xi32>
    %cst_37 = arith.constant 0xFF800000 : f32
    %104 = vector.broadcast %cst_37 : f32 to vector<8x32xf32>
    %105 = arith.select %103, %104, %93 : vector<8x32xi1>, vector<8x32xf32>
    %cst_38 = arith.constant dense<0xFF800000> : vector<32xf32>
    %106 = vector.multi_reduction <maximumf>, %105, %cst_38 [0] : vector<8x32xf32> to vector<32xf32>
    %107 = vector.shape_cast %106 : vector<32xf32> to vector<1x32xf32>
    %108 = vector.broadcast %107 : vector<1x32xf32> to vector<8x32xf32>
    %109 = arith.cmpf oeq, %105, %108 : vector<8x32xf32>
    %c8_i32_39 = arith.constant 8 : i32
    %110 = vector.broadcast %c8_i32_39 : i32 to vector<8x32xi32>
    %111 = arith.select %109, %81, %110 : vector<8x32xi1>, vector<8x32xi32>
    %cst_40 = arith.constant dense<2147483647> : vector<32xi32>
    %112 = vector.multi_reduction <minsi>, %111, %cst_40 [0] : vector<8x32xi32> to vector<32xi32>
    %113 = vector.shape_cast %112 : vector<32xi32> to vector<1x32xi32>
    %114 = vector.broadcast %113 : vector<1x32xi32> to vector<8x32xi32>
    %115 = arith.cmpi eq, %81, %114 : vector<8x32xi32>
    %cst_41 = arith.constant 0xFF800000 : f32
    %116 = vector.broadcast %cst_41 : f32 to vector<8x32xf32>
    %117 = arith.select %115, %116, %105 : vector<8x32xi1>, vector<8x32xf32>
    %cst_42 = arith.constant dense<0xFF800000> : vector<32xf32>
    %118 = vector.multi_reduction <maximumf>, %117, %cst_42 [0] : vector<8x32xf32> to vector<32xf32>
    %119 = vector.shape_cast %118 : vector<32xf32> to vector<1x32xf32>
    %120 = vector.broadcast %119 : vector<1x32xf32> to vector<8x32xf32>
    %121 = arith.cmpf oeq, %117, %120 : vector<8x32xf32>
    %c8_i32_43 = arith.constant 8 : i32
    %122 = vector.broadcast %c8_i32_43 : i32 to vector<8x32xi32>
    %123 = arith.select %121, %81, %122 : vector<8x32xi1>, vector<8x32xi32>
    %cst_44 = arith.constant dense<2147483647> : vector<32xi32>
    %124 = vector.multi_reduction <minsi>, %123, %cst_44 [0] : vector<8x32xi32> to vector<32xi32>
    %125 = vector.shape_cast %124 : vector<32xi32> to vector<1x32xi32>
    %126 = vector.broadcast %125 : vector<1x32xi32> to vector<8x32xi32>
    %127 = arith.cmpi eq, %81, %126 : vector<8x32xi32>
    %cst_45 = arith.constant 0xFF800000 : f32
    %128 = vector.broadcast %cst_45 : f32 to vector<8x32xf32>
    %129 = arith.select %127, %128, %117 : vector<8x32xi1>, vector<8x32xf32>
    %cst_46 = arith.constant dense<0xFF800000> : vector<32xf32>
    %130 = vector.multi_reduction <maximumf>, %129, %cst_46 [0] : vector<8x32xf32> to vector<32xf32>
    %131 = vector.shape_cast %130 : vector<32xf32> to vector<1x32xf32>
    %132 = tpu.concatenate %83, %95, %107, %119, %131 in 0 : vector<1x32xf32>, vector<1x32xf32>, vector<1x32xf32>, vector<1x32xf32>, vector<1x32xf32> -> vector<5x32xf32>
    %c0_47 = arith.constant 0 : index
    %c0_48 = arith.constant 0 : index
    %133 = vector.load %arg6[%c0_47, %c0_48] : memref<32x96xf32, #tpu.memory_space<vmem>>, vector<32x96xf32>
    %cst_49 = arith.constant dense<0.000000e+00> : vector<5x96xf32>
    %134 = tpu.matmul %132, %133, %cst_49 {dimension_numbers = #tpu.dot_dimension_numbers<[1], [0], [0], [1], [0, 0, 1, 1], [], []>} : vector<5x32xf32>, vector<32x96xf32>, vector<5x96xf32> -> vector<5x96xf32>
    %c0_50 = arith.constant 0 : index
    %c0_51 = arith.constant 0 : index
    %135 = vector.load %arg7[%c0_50, %c0_51] : memref<1x96xf32, #tpu.memory_space<vmem>>, vector<1x96xf32>
    %136 = vector.broadcast %135 : vector<1x96xf32> to vector<5x96xf32>
    %137 = arith.addf %134, %136 : vector<5x96xf32>
    %138 = vector.extract_strided_slice %137 {offsets = [0, 0], sizes = [5, 8], strides = [1, 1]} : vector<5x96xf32> to vector<5x8xf32>
    %139 = vector.extract_strided_slice %137 {offsets = [0, 32], sizes = [5, 8], strides = [1, 1]} : vector<5x96xf32> to vector<5x8xf32>
    %140 = vector.extract_strided_slice %137 {offsets = [0, 64], sizes = [5, 8], strides = [1, 1]} : vector<5x96xf32> to vector<5x8xf32>
    %cst_52 = arith.constant dense<0.000000e+00> : vector<5x5xf32>
    %141 = tpu.matmul %138, %139, %cst_52 {dimension_numbers = #tpu.dot_dimension_numbers<[1], [1], [0], [0], [0, 0, 1, 0], [], []>} : vector<5x8xf32>, vector<5x8xf32>, vector<5x5xf32> -> vector<5x5xf32>
    %cst_53 = arith.constant 0.353553385 : f32
    %142 = vector.broadcast %cst_53 : f32 to vector<5x5xf32>
    %143 = arith.mulf %141, %142 : vector<5x5xf32>
    %cst_54 = arith.constant dense<0xFF800000> : vector<5xf32>
    %144 = vector.multi_reduction <maximumf>, %143, %cst_54 [1] : vector<5x5xf32> to vector<5xf32>
    %145 = vector.shape_cast %144 : vector<5xf32> to vector<5x1xf32>
    %146 = vector.broadcast %145 : vector<5x1xf32> to vector<5x5xf32>
    %147 = arith.subf %143, %146 : vector<5x5xf32>
    %148 = math.exp %147 : vector<5x5xf32>
    %cst_55 = arith.constant dense<0.000000e+00> : vector<5xf32>
    %149 = vector.multi_reduction <add>, %148, %cst_55 [1] : vector<5x5xf32> to vector<5xf32>
    %150 = vector.shape_cast %149 : vector<5xf32> to vector<5x1xf32>
    %151 = tpu.reciprocal %150 {approx = true} : vector<5x1xf32> -> vector<5x1xf32>
    %152 = vector.broadcast %151 : vector<5x1xf32> to vector<5x5xf32>
    %153 = arith.mulf %148, %152 : vector<5x5xf32>
    %cst_56 = arith.constant dense<0.000000e+00> : vector<5x8xf32>
    %154 = tpu.matmul %153, %140, %cst_56 {dimension_numbers = #tpu.dot_dimension_numbers<[1], [0], [0], [1], [0, 0, 1, 1], [], []>} : vector<5x5xf32>, vector<5x8xf32>, vector<5x8xf32> -> vector<5x8xf32>
    %155 = vector.extract_strided_slice %137 {offsets = [0, 8], sizes = [5, 8], strides = [1, 1]} : vector<5x96xf32> to vector<5x8xf32>
    %156 = vector.extract_strided_slice %137 {offsets = [0, 40], sizes = [5, 8], strides = [1, 1]} : vector<5x96xf32> to vector<5x8xf32>
    %157 = vector.extract_strided_slice %137 {offsets = [0, 72], sizes = [5, 8], strides = [1, 1]} : vector<5x96xf32> to vector<5x8xf32>
    %cst_57 = arith.constant dense<0.000000e+00> : vector<5x5xf32>
    %158 = tpu.matmul %155, %156, %cst_57 {dimension_numbers = #tpu.dot_dimension_numbers<[1], [1], [0], [0], [0, 0, 1, 0], [], []>} : vector<5x8xf32>, vector<5x8xf32>, vector<5x5xf32> -> vector<5x5xf32>
    %cst_58 = arith.constant 0.353553385 : f32
    %159 = vector.broadcast %cst_58 : f32 to vector<5x5xf32>
    %160 = arith.mulf %158, %159 : vector<5x5xf32>
    %cst_59 = arith.constant dense<0xFF800000> : vector<5xf32>
    %161 = vector.multi_reduction <maximumf>, %160, %cst_59 [1] : vector<5x5xf32> to vector<5xf32>
    %162 = vector.shape_cast %161 : vector<5xf32> to vector<5x1xf32>
    %163 = vector.broadcast %162 : vector<5x1xf32> to vector<5x5xf32>
    %164 = arith.subf %160, %163 : vector<5x5xf32>
    %165 = math.exp %164 : vector<5x5xf32>
    %cst_60 = arith.constant dense<0.000000e+00> : vector<5xf32>
    %166 = vector.multi_reduction <add>, %165, %cst_60 [1] : vector<5x5xf32> to vector<5xf32>
    %167 = vector.shape_cast %166 : vector<5xf32> to vector<5x1xf32>
    %168 = tpu.reciprocal %167 {approx = true} : vector<5x1xf32> -> vector<5x1xf32>
    %169 = vector.broadcast %168 : vector<5x1xf32> to vector<5x5xf32>
    %170 = arith.mulf %165, %169 : vector<5x5xf32>
    %cst_61 = arith.constant dense<0.000000e+00> : vector<5x8xf32>
    %171 = tpu.matmul %170, %157, %cst_61 {dimension_numbers = #tpu.dot_dimension_numbers<[1], [0], [0], [1], [0, 0, 1, 1], [], []>} : vector<5x5xf32>, vector<5x8xf32>, vector<5x8xf32> -> vector<5x8xf32>
    %172 = vector.extract_strided_slice %137 {offsets = [0, 16], sizes = [5, 8], strides = [1, 1]} : vector<5x96xf32> to vector<5x8xf32>
    %173 = vector.extract_strided_slice %137 {offsets = [0, 48], sizes = [5, 8], strides = [1, 1]} : vector<5x96xf32> to vector<5x8xf32>
    %174 = vector.extract_strided_slice %137 {offsets = [0, 80], sizes = [5, 8], strides = [1, 1]} : vector<5x96xf32> to vector<5x8xf32>
    %cst_62 = arith.constant dense<0.000000e+00> : vector<5x5xf32>
    %175 = tpu.matmul %172, %173, %cst_62 {dimension_numbers = #tpu.dot_dimension_numbers<[1], [1], [0], [0], [0, 0, 1, 0], [], []>} : vector<5x8xf32>, vector<5x8xf32>, vector<5x5xf32> -> vector<5x5xf32>
    %cst_63 = arith.constant 0.353553385 : f32
    %176 = vector.broadcast %cst_63 : f32 to vector<5x5xf32>
    %177 = arith.mulf %175, %176 : vector<5x5xf32>
    %cst_64 = arith.constant dense<0xFF800000> : vector<5xf32>
    %178 = vector.multi_reduction <maximumf>, %177, %cst_64 [1] : vector<5x5xf32> to vector<5xf32>
    %179 = vector.shape_cast %178 : vector<5xf32> to vector<5x1xf32>
    %180 = vector.broadcast %179 : vector<5x1xf32> to vector<5x5xf32>
    %181 = arith.subf %177, %180 : vector<5x5xf32>
    %182 = math.exp %181 : vector<5x5xf32>
    %cst_65 = arith.constant dense<0.000000e+00> : vector<5xf32>
    %183 = vector.multi_reduction <add>, %182, %cst_65 [1] : vector<5x5xf32> to vector<5xf32>
    %184 = vector.shape_cast %183 : vector<5xf32> to vector<5x1xf32>
    %185 = tpu.reciprocal %184 {approx = true} : vector<5x1xf32> -> vector<5x1xf32>
    %186 = vector.broadcast %185 : vector<5x1xf32> to vector<5x5xf32>
    %187 = arith.mulf %182, %186 : vector<5x5xf32>
    %cst_66 = arith.constant dense<0.000000e+00> : vector<5x8xf32>
    %188 = tpu.matmul %187, %174, %cst_66 {dimension_numbers = #tpu.dot_dimension_numbers<[1], [0], [0], [1], [0, 0, 1, 1], [], []>} : vector<5x5xf32>, vector<5x8xf32>, vector<5x8xf32> -> vector<5x8xf32>
    %189 = vector.extract_strided_slice %137 {offsets = [0, 24], sizes = [5, 8], strides = [1, 1]} : vector<5x96xf32> to vector<5x8xf32>
    %190 = vector.extract_strided_slice %137 {offsets = [0, 56], sizes = [5, 8], strides = [1, 1]} : vector<5x96xf32> to vector<5x8xf32>
    %191 = vector.extract_strided_slice %137 {offsets = [0, 88], sizes = [5, 8], strides = [1, 1]} : vector<5x96xf32> to vector<5x8xf32>
    %cst_67 = arith.constant dense<0.000000e+00> : vector<5x5xf32>
    %192 = tpu.matmul %189, %190, %cst_67 {dimension_numbers = #tpu.dot_dimension_numbers<[1], [1], [0], [0], [0, 0, 1, 0], [], []>} : vector<5x8xf32>, vector<5x8xf32>, vector<5x5xf32> -> vector<5x5xf32>
    %cst_68 = arith.constant 0.353553385 : f32
    %193 = vector.broadcast %cst_68 : f32 to vector<5x5xf32>
    %194 = arith.mulf %192, %193 : vector<5x5xf32>
    %cst_69 = arith.constant dense<0xFF800000> : vector<5xf32>
    %195 = vector.multi_reduction <maximumf>, %194, %cst_69 [1] : vector<5x5xf32> to vector<5xf32>
    %196 = vector.shape_cast %195 : vector<5xf32> to vector<5x1xf32>
    %197 = vector.broadcast %196 : vector<5x1xf32> to vector<5x5xf32>
    %198 = arith.subf %194, %197 : vector<5x5xf32>
    %199 = math.exp %198 : vector<5x5xf32>
    %cst_70 = arith.constant dense<0.000000e+00> : vector<5xf32>
    %200 = vector.multi_reduction <add>, %199, %cst_70 [1] : vector<5x5xf32> to vector<5xf32>
    %201 = vector.shape_cast %200 : vector<5xf32> to vector<5x1xf32>
    %202 = tpu.reciprocal %201 {approx = true} : vector<5x1xf32> -> vector<5x1xf32>
    %203 = vector.broadcast %202 : vector<5x1xf32> to vector<5x5xf32>
    %204 = arith.mulf %199, %203 : vector<5x5xf32>
    %cst_71 = arith.constant dense<0.000000e+00> : vector<5x8xf32>
    %205 = tpu.matmul %204, %191, %cst_71 {dimension_numbers = #tpu.dot_dimension_numbers<[1], [0], [0], [1], [0, 0, 1, 1], [], []>} : vector<5x5xf32>, vector<5x8xf32>, vector<5x8xf32> -> vector<5x8xf32>
    %206 = tpu.concatenate %154, %171, %188, %205 in 1 : vector<5x8xf32>, vector<5x8xf32>, vector<5x8xf32>, vector<5x8xf32> -> vector<5x32xf32>
    %cst_72 = arith.constant dense<0.000000e+00> : vector<32xf32>
    %207 = vector.multi_reduction <add>, %206, %cst_72 [0] : vector<5x32xf32> to vector<32xf32>
    %208 = vector.shape_cast %207 : vector<32xf32> to vector<1x32xf32>
    %cst_73 = arith.constant 5.000000e+00 : f32
    %209 = vector.broadcast %cst_73 : f32 to vector<1x32xf32>
    %210 = arith.divf %208, %209 : vector<1x32xf32>
    %c0_74 = arith.constant 0 : index
    %c0_75 = arith.constant 0 : index
    %211 = vector.load %arg8[%c0_74, %c0_75] : memref<32x32xf32, #tpu.memory_space<vmem>>, vector<32x32xf32>
    %cst_76 = arith.constant dense<0.000000e+00> : vector<1x32xf32>
    %212 = tpu.matmul %210, %211, %cst_76 {dimension_numbers = #tpu.dot_dimension_numbers<[1], [0], [0], [1], [0, 0, 1, 1], [], []>} : vector<1x32xf32>, vector<32x32xf32>, vector<1x32xf32> -> vector<1x32xf32>
    %c0_77 = arith.constant 0 : index
    %c0_78 = arith.constant 0 : index
    %213 = vector.load %arg10[%c0_77, %c0_78] : memref<1x32xf32, #tpu.memory_space<vmem>>, vector<1x32xf32>
    %214 = arith.addf %212, %213 : vector<1x32xf32>
    %c0_79 = arith.constant 0 : index
    %c0_80 = arith.constant 0 : index
    %215 = vector.load %arg9[%c0_79, %c0_80] : memref<32x32xf32, #tpu.memory_space<vmem>>, vector<32x32xf32>
    %cst_81 = arith.constant dense<0.000000e+00> : vector<8x32xf32>
    %216 = tpu.matmul %1, %215, %cst_81 {dimension_numbers = #tpu.dot_dimension_numbers<[1], [0], [0], [1], [0, 0, 1, 1], [], []>} : vector<8x32xf32>, vector<32x32xf32>, vector<8x32xf32> -> vector<8x32xf32>
    %217 = vector.broadcast %214 : vector<1x32xf32> to vector<8x32xf32>
    %218 = arith.addf %216, %217 : vector<8x32xf32>
    %c0_82 = arith.constant 0 : index
    %c0_83 = arith.constant 0 : index
    %c0_84 = arith.constant 0 : index
    %219 = vector.load %arg11[%c0_82, %c0_83, %c0_84] : memref<1x8x32xf32, #tpu.memory_space<vmem>>, vector<1x8x32xf32>
    %220 = vector.shape_cast %219 : vector<1x8x32xf32> to vector<8x32xf32>
    %221 = vector.shape_cast %218 : vector<8x32xf32> to vector<1x8x32xf32>
    tpu.vector_store %arg11[%c0_82, %c0_83, %c0_84], %221 {strides = array<i32>} : memref<1x8x32xf32, #tpu.memory_space<vmem>>, vector<1x8x32xf32>,
    return
  }
  func.func @transform_0(%arg0: i32) -> (i32, i32, i32) {
    %c0_i32 = arith.constant 0 : i32
    %c0_i32_0 = arith.constant 0 : i32
    %c0_i32_1 = arith.constant 0 : i32
    return %arg0, %c0_i32, %c0_i32_0 : i32, i32, i32
  }
  func.func @transform_1(%arg0: i32) -> (i32, i32) {
    %c0_i32 = arith.constant 0 : i32
    %c0_i32_0 = arith.constant 0 : i32
    %c0_i32_1 = arith.constant 0 : i32
    return %c0_i32, %c0_i32_0 : i32, i32
  }
  func.func @transform_2(%arg0: i32) -> (i32, i32) {
    %c0_i32 = arith.constant 0 : i32
    %c0_i32_0 = arith.constant 0 : i32
    %c0_i32_1 = arith.constant 0 : i32
    return %c0_i32, %c0_i32_0 : i32, i32
  }
  func.func @transform_3(%arg0: i32) -> (i32, i32) {
    %c0_i32 = arith.constant 0 : i32
    %c0_i32_0 = arith.constant 0 : i32
    %c0_i32_1 = arith.constant 0 : i32
    return %c0_i32, %c0_i32_0 : i32, i32
  }
  func.func @transform_4(%arg0: i32) -> (i32, i32) {
    %c0_i32 = arith.constant 0 : i32
    %c0_i32_0 = arith.constant 0 : i32
    %c0_i32_1 = arith.constant 0 : i32
    return %c0_i32, %c0_i32_0 : i32, i32
  }
  func.func @transform_5(%arg0: i32) -> (i32, i32) {
    %c0_i32 = arith.constant 0 : i32
    %c0_i32_0 = arith.constant 0 : i32
    %c0_i32_1 = arith.constant 0 : i32
    return %c0_i32, %c0_i32_0 : i32, i32
  }
  func.func @transform_6(%arg0: i32) -> (i32, i32) {
    %c0_i32 = arith.constant 0 : i32
    %c0_i32_0 = arith.constant 0 : i32
    %c0_i32_1 = arith.constant 0 : i32
    return %c0_i32, %c0_i32_0 : i32, i32
  }
  func.func @transform_7(%arg0: i32) -> (i32, i32) {
    %c0_i32 = arith.constant 0 : i32
    %c0_i32_0 = arith.constant 0 : i32
    %c0_i32_1 = arith.constant 0 : i32
    return %c0_i32, %c0_i32_0 : i32, i32
  }
  func.func @transform_8(%arg0: i32) -> (i32, i32) {
    %c0_i32 = arith.constant 0 : i32
    %c0_i32_0 = arith.constant 0 : i32
    %c0_i32_1 = arith.constant 0 : i32
    return %c0_i32, %c0_i32_0 : i32, i32
  }
  func.func @transform_9(%arg0: i32) -> (i32, i32) {
    %c0_i32 = arith.constant 0 : i32
    %c0_i32_0 = arith.constant 0 : i32
    %c0_i32_1 = arith.constant 0 : i32
    return %c0_i32, %c0_i32_0 : i32, i32
  }
  func.func @transform_10(%arg0: i32) -> (i32, i32, i32) {
    %c0_i32 = arith.constant 0 : i32
    %c0_i32_0 = arith.constant 0 : i32
    %c0_i32_1 = arith.constant 0 : i32
    return %arg0, %c0_i32, %c0_i32_0 : i32, i32, i32
  }
}

</mosaic_0001>

<bundles_post_ra>
// kernel: tpu_custom_call.1
= control target key start
LH: loop header
LB: loop body
LE: loop exit
PB: predicated region body
PF: predicated region fallthrough
CT: control target
= control target key end

     0   :  { %s2293_s0 = inlined_call_operand.hbm [shape: f32[2,8,32], index: 0, kind: input, shape index: {}]   ;;  %s2294_s1 = inlined_call_operand.hbm [shape: f32[32,96], index: 1, kind: input, shape index: {}]   ;;  %s2295_s2 = inlined_call_operand.vmem [shape: f32[1,96], index: 2, kind: input, shape index: {}]   ;;  %s2296_s3 = inlined_call_operand.hbm [shape: f32[32,32], index: 3, kind: input, shape index: {}]   ;;  %s2297_s4 = inlined_call_operand.vmem [shape: f32[1,32], index: 4, kind: input, shape index: {}]   ;;  %s2298_s5 = inlined_call_operand.hbm [shape: f32[32,96], index: 5, kind: input, shape index: {}]   ;;  %s2299_s6 = inlined_call_operand.vmem [shape: f32[1,96], index: 6, kind: input, shape index: {}]   ;;  %s2300_s7 = inlined_call_operand.hbm [shape: f32[32,32], index: 7, kind: input, shape index: {}]   ;;  %s2301_s8 = inlined_call_operand.hbm [shape: f32[32,32], index: 8, kind: input, shape index: {}]   ;;  %s2302_s9 = inlined_call_operand.vmem [shape: f32[1,32], index: 9, kind: input, shape index: {}]   ;;  %s2303_s10 = inlined_call_operand.hbm [shape: f32[2,8,32], index: 10, kind: output, shape index: {}]  }
   0x1   :  { %2307 = sst [smem:[#allocation19_spill]] %s2294_s1 }
   0x2   :  { %2308 = sst [smem:[#allocation20_spill]] %s2296_s3 }
   0x3   :  { %2309 = sst [smem:[#allocation21_spill]] %s2298_s5 }
   0x4   :  { %2310 = sst [smem:[#allocation22_spill]] %s2300_s7 }
   0x5   :  { %15 = vsyncpa [#allocation3], 0 }
   0x6   :  { %17 = vsyncpa [#allocation3 + $0x1], 0 }
   0x7   :  { %18 = vsyncpa [#allocation6], 0 }
   0x8   :  { %19 = vsyncpa [#allocation9], 0 }
   0x9   :  { %20 = vsyncpa [#allocation12], 0 }
   0xa   :  { %21 = vsyncpa [#allocation4], 0 }
   0xb   :  { %23 = vsyncpa [#allocation4 + $0x1], 0  ;;  %s1969_s13 = smov 0   ;;  %s1971_s14 = smov 0  }
   0xc   :  { %s1973_s15 = smov 0   ;;  %s1975_s16 = smov 0  }
   0xd LB: > { %s2311_s1 = sld [smem:[#allocation19_spill]]  ;;  %s1993_s20 = sadd.s32 4294967295, %s1890_s16   ;;  %s1890_s16 = sphi %s1975_s16, %s2328_s16   ;;  %s1886_s15 = sphi %s1973_s15, %s2327_s15   ;;  %s1882_s14 = sphi %s1971_s14, %s2326_s14   ;;  %s1878_s13 = sphi %s1969_s13, %s2325_s13  }
   0xe   : > { %p1427_p0 = scmp.ge.s32.totalorder %s1890_s16, 1  ;;  %p50_p1 = scmp.eq.s32.totalorder %s1993_s20, 0 }
   0xf   : > { %p275_p2 = scmp.lt.s32.totalorder %s1890_s16, 3  ;;  %s1892_s22 = smov [#allocation5]  }
  0x10   : > { %s288_s23 = sshll.u32 %s1892_s22, 4  ;;  %s2313_s5 = sld [smem:[#allocation21_spill]]  ;;  %s289_s23 = int_to_ptr.vmem [resolvable:$true] %s288_s23 }
  0x11   : > { %p1998_p3 = pnand %p1427_p0, %p275_p2  ;;  %s2315_s3 = sld [smem:[#allocation20_spill]] }
  0x12   : > { %s1893_s11 = smov [#allocation8]   ;;  %s1894_s17 = smov 128  }
  0x13   : > { %s286_s19 = sshll.u32 %s2311_s1, 4  ;;  %p1505_p4 = pneg %p1998_p3  ;;  %s287_s19 = int_to_ptr.hbm [resolvable:$true] %s286_s19 }
  0x14   : > { %s322_s12 = sshll.u32 %s1893_s11, 4  ;;  %s1895_s18 = smov 8   ;;  %s323_s12 = int_to_ptr.vmem [resolvable:$true] %s322_s12 }
  0x15   : > { %p2010_p6 = pnand %p1505_p4, %p50_p1  ;;  %s2316_s7 = sld [smem:[#allocation22_spill]] }
  0x16   : > { %s320_s26 = sshll.u32 %s2313_s5, 4  ;;  %s1896_s1 = smov [#allocation7]   ;;  %s321_s26 = int_to_ptr.hbm [resolvable:$true] %s320_s26 }
  0x17   : > { %s303_s30 = sshll.u32 %s2315_s3, 4  ;;  %s305_s28 = sshll.u32 %s1896_s1, 4  ;;  %s304_s30 = int_to_ptr.hbm [resolvable:$true] %s303_s30  ;;  %s306_s28 = int_to_ptr.vmem [resolvable:$true] %s305_s28 }
  0x18   : > { %1508 = dma.hbm_to_vmem [thread:$0]  (!%p2010_p6), %s287_s19, 512, %s289_s23, [#allocation6], %s1894_s17, %s1894_s17, %s1895_s18  }
  0x19   : > { %1514 = dma.hbm_to_vmem [thread:$0]  (!%p2010_p6), %s321_s26, 512, %s323_s12, [#allocation9], %s1894_s17, %s1894_s17, %s1895_s18  }
  0x1a   : > { %1511 = dma.hbm_to_vmem [thread:$0]  (!%p2010_p6), %s304_s30, 512, %s306_s28, [#allocation6], %s1894_s17, %s1894_s17, %s1895_s18  }
  0x1b   : > { %s337_s25 = sshll.u32 %s2316_s7, 4  ;;  %s1897_s19 = smov [#allocation10]   ;;  %s338_s25 = int_to_ptr.hbm [resolvable:$true] %s337_s25 }
  0x1c   : > { %s339_s23 = sshll.u32 %s1897_s19, 4  ;;  %s351_s11 = sshll.u32 %s2301_s8, 4  ;;  %s340_s23 = int_to_ptr.vmem [resolvable:$true] %s339_s23  ;;  %s352_s11 = int_to_ptr.hbm [resolvable:$true] %s351_s11 }
  0x1d   : > { %1517 = dma.hbm_to_vmem [thread:$0]  (!%p2010_p6), %s338_s25, 512, %s340_s23, [#allocation9], %s1894_s17, %s1894_s17, %s1895_s18  }
  0x1e   : > { %s1898_s1 = smov [#allocation11]   ;;  %s1426_s30 = sadd.s32 4294967294, %s1890_s16  }
  0x1f   : > { %s353_s12 = sshll.u32 %s1898_s1, 4  ;;  %s2035_s22 = sadd.s32 1, %s1890_s16   ;;  %s354_s12 = int_to_ptr.vmem [resolvable:$true] %s353_s12 }
  0x20   : > { %1520 = dma.hbm_to_vmem [thread:$0]  (!%p2010_p6), %s352_s11, 512, %s354_s12, [#allocation12], %s1894_s17, %s1894_s17, %s1895_s18  }
  0x21   : > { %s36_s24 = sadd.s32 1, %s1886_s15  ;;  %s33_s28 = ssub.s32 %s1890_s16, %s2035_s22 }
  0x22   : > { %p43_p7 = scmp.ne.s32.totalorder %s1886_s15, %s1882_s14  ;;  %p34_p8 = scmp.eq.s32.totalorder %s33_s28, 0 }
  0x23   : > { %p44_p9 = scmp.eq.s32.totalorder %s1890_s16, 0  ;;  %p49_p10 = scmp.ne.s32.totalorder %s1882_s14, %s1878_s13 }
  0x24   : > { %p262_p11 = scmp.eq.s32.totalorder %s1993_s20, 1  ;;  %p268_p0 = scmp.eq.s32.totalorder %s1426_s30, 1 }
  0x25   : > { %s2047_s25 = scalar_select %p34_p8, %s1886_s15, %s36_s24  }
  0x26   : > { %p2051_p12 = por %p50_p1, %p49_p10  ;;  %p2055_p13 = por %p262_p11, %p43_p7 }
  0x27   : > { %p45_p2 = por %p44_p9, %p43_p7  ;;  %s370_s18 = sand.u32 1, %s1886_s15  }
  0x28   : > { %p2060_p4 = por %p268_p0, %p49_p10  ;;  %p1534_p6 = scmp.lt.s32.totalorder %s1890_s16, 2 }
  0x29   : > { %s1434_s23 = sshll.u32 %s370_s18, 3  ;;  %s1435_s26 = sshll.u32 %s1890_s16, 3 }
  0x2a   : > { %s378_s1 = scalar_lea.hbm %s2293_s0, %s1435_s26  ;;  %s374_s24 = scalar_lea.vmem [#allocation2], %s1434_s23 }
  0x2b   : > { %s380_s12 = sshll.u32 %s378_s1, 4  ;;  %s382_s28 = sshll.u32 %s374_s24, 4  ;;  %s381_s12 = int_to_ptr.hbm [resolvable:$true] %s380_s12  ;;  %s383_s28 = int_to_ptr.vmem [resolvable:$true] %s382_s28 }
  0x2c   : > { %p2069_p8 = pnand %p1534_p6, %p45_p2  ;;  %s371_s3 = scalar_lea.sflag [#allocation3], %s370_s18 }
  0x2d   : > { %s1782_s5 = sshra.s32 %s381_s12, 4  ;;  %s1789_s23 = scalar_lea.hbm %s2293_s0, 16  ;;  %s1783_s5 = int_to_ptr.hbm [resolvable:$true] %s1782_s5 }
  0x2e   : > { %s1784_s7 = scalar_lea.hbm %s1783_s5, 8  ;;  %p1786_p9 = pneg %p2069_p8 }
  0x2f   : > { %p1785_p7 = scmp.ne.s32.totalorder %s1783_s5, %s1784_s7  ;;  %p1790_p0 = scmp.lt.s32.totalorder %s1783_s5, %s2293_s0 }
  0x30   : > { %p1791_p2 = scmp.lt.s32.totalorder %s1789_s23, %s1784_s7 }
  0x31   : > { %p1787_p10 = pnand %p1786_p9, %p1785_p7 }
  0x32   : > { %p1792_p6 = por %p1791_p2, %p1790_p0 }
  0x33   : > { %p1788_p11 = pneg %p1787_p10 }
  0x35   : > { %p1793_p5 = pnand %p1792_p6, %p1788_p11 }
  0x37   : > { %1796 = shalt.err (!%p1793_p5)
}
  0x38   : > { %1524 = dma.hbm_to_vmem [thread:$0]  (!%p2069_p8), %s381_s12, 128, %s383_s28, %s371_s3  }
  0x39   : > { %391 = sbr.rel (%p1998_p3) target bundleno = 2309 (0x905), region = 60  ;;  %s2086_s18 = sand.u32 (!%p1998_p3), 1, %s1882_s14  }
  0x3a   : > { %s2304_s24 = sshll.u32 (!%p1998_p3), %s2086_s18, 3  ;;  %s394_s26 = scalar_lea.sflag (!%p1998_p3), [#allocation3], %s2086_s18 }
  0x3b   : > { %s397_s5 = scalar_lea.vmem (!%p1998_p3), [#allocation2], %s2304_s24 }
  0x3e   : > { %1857 = dma.done.wait (%p2051_p12), %s394_s26, 128  }
  0x3f   : > { %1859 = vsyncadd (%p2051_p12), %s394_s26, 4294967168 }
  0x40   : > { %1861 = dma.done.wait (%p50_p1), [#allocation6], 1024  }
  0x41   : > { %1863 = vsyncadd (%p50_p1), [#allocation6], 4294966272 }
  0x42   : > { %1865 = dma.done.wait (%p50_p1), [#allocation9], 1024  }
  0x43   : > { %1867 = vsyncadd (%p50_p1), [#allocation9], 4294966272 }
  0x44   : > { %1869 = dma.done.wait (%p50_p1), [#allocation12], 512  }
  0x45   : > { %1871 = vsyncadd (%p50_p1), [#allocation12], 4294966784  ;;  %v464_v0 = vld [vmem:[#allocation5 + $0x18] sm:$0xff]  ;;  %v463_v1 = vld [vmem:[#allocation5 + $0x10] sm:$0xff]  ;;  %vm469_vm0 = vcmask 261120   ;;  %s1899_s21 = smov 72  }
  0x46   : > { %485 = vmatpush.msra.mxu0 %v464_v0  ;;  %v462_v2 = vld [vmem:[#allocation5 + $0x8] sm:$0xff]  ;;  %v461_v3 = vld [vmem:[#allocation5] sm:$0xff]  ;;  %v2108_v4 = vld [vmem:[%s397_s5] sm:$0xff]  ;;  %s1900_s27 = smov 120   ;;  %s1901_s12 = smov 96   ;;  %vm496_vm1 = vcmask 64512  }
  0x47   : > { %v1595_v5 = vld [vmem:[%s2295_s2] ss:$0 sm:$0xff]  ;;  %s1902_s28 = smov 112   ;;  %s1903_s30 = smov 80   ;;  %vm770_vm2 = vcmask 130048   ;;  %vm772_vm3 = vcmask 195584  }
  0x48   : > { %486 = vmatpush.msra.mxu0 %v463_v1  ;;  %s1904_s29 = smov 88   ;;  %s1905_s23 = smov 104   ;;  %vm898_vm9 = vcmask 1040384  }
  0x49   : > { %s1906_s11 = smov 64   ;;  %s1907_s1 = smov 40  }
  0x4a   : > { %487 = vmatpush.msra.mxu0 %v462_v2  ;;  %s1908_s26 = smov 56   ;;  %s1909_s5 = smov 48  }
  0x4b   : > { %s1910_s3 = smov 16   ;;  %s2306_s7 = smov 8  }
  0x4c   : > { %488 = vmatpush.msra.mxu0 %v461_v3  ;;  %s2305_s24 = smov 24   ;;  %v777_v3 = vld [vmem:[#allocation7 + $0x18] sm:$0xff] }
  0x4d   : > { %1444 = vmatmul.msk.f32.vlgmr.msra.gmra.mxu0 %vm469_vm0, %v2108_v4 }
  0xca   : > { %v490_v6 = vpop.f32.mrf.mxu0 }
  0xcb   : > { %v2115_v7 = vadd.f32 %v1595_v5, %v490_v6  ;;  %v776_v5 = vld [vmem:[#allocation7 + $0x10] sm:$0xff]  ;;  %v775_v6 = vld [vmem:[#allocation7 + $0x8] sm:$0xff] }
  0xcd   : > { %693 = vrot.lane.b32.xlu2 %v2115_v7, %s1899_s21  ;;  %559 = vrot.lane.b32.xlu1 %v2115_v7, %s1900_s27 }
  0xce   : > { %494 = vrot.lane.b32.xlu0 %v2115_v7, %s1901_s12 }
  0xd5   : > { %625 = vrot.lane.b32.xlu2 %v2115_v7, %s1902_s28  ;;  %627 = vrot.lane.b32.xlu1 %v2115_v7, %s1903_s30 }
  0xd6   : > { %561 = vrot.lane.b32.xlu0 %v2115_v7, %s1904_s29 }
  0xde   : > { %691 = vrot.lane.b32.xlu0 %v2115_v7, %s1905_s23 }
 0x127   : > { %v694_v8 = vpop.permute.xlu2 %693 }
 0x128   : > { %1454 = vmatpush.xpose.msk.msrb.mxu0 %vm496_vm1, %v694_v8 }
 0x12f   : > { %v626_v13 = vpop.permute.xlu2 %625 }
 0x13f   : > { %v560_v9 = vpop.permute.xlu1 %559 }
 0x140   : > { %v495_v10 = vpop.permute.xlu0 %494 }
 0x141   : > { %1445 = vmatpush.xpose.msk.msra.mxu1 %vm496_vm1, %v495_v10 }
 0x144   : > { %1446 = vmatmul.msk.f32.vlgmr.msra.gmra.mxu1 %vm496_vm1, %v2115_v7 }
 0x147   : > { %v628_v11 = vpop.permute.xlu1 %627 }
 0x148   : > { %v562_v12 = vpop.permute.xlu0 %561  ;;  %1451 = vmatpush.xpose.msk.msrb.mxu1 %vm496_vm1, %v628_v11 }
 0x149   : > { %1448 = vmatpush.xpose.msk.msra.mxu3 %vm496_vm1, %v562_v12 }
 0x14c   : > { %1449 = vmatmul.msk.f32.vlgmr.msra.gmra.mxu3 %vm496_vm1, %v560_v9  ;;  %1452 = vmatmul.msk.f32.vlgmr.msrb.gmra.mxu1 %vm496_vm1, %v626_v13 }
 0x14d   : > { %797 = vmatpush.msra.mxu1 %v777_v3 }
 0x14f   : > { %798 = vmatpush.msra.mxu1 %v776_v5 }
 0x150   : > { %v692_v14 = vpop.permute.xlu0 %691 }
 0x151   : > { %1455 = vmatmul.msk.f32.vlgmr.msrb.gmra.mxu0 %vm496_vm1, %v692_v14  ;;  %799 = vmatpush.msra.mxu1 %v775_v6  ;;  %v1596_v14 = vld [vmem:[%s2297_s4] ss:$0 sm:$0xff] }
 0x1c1   : > { %v518_v15 = vpop.f32.mrf.mxu1 }
 0x1c2   : > { %v521_v16 = vmul.f32 0.35355338, %v518_v15 }
 0x1c4   : > { %v522_v17 = vsel %vm496_vm1, %v521_v16, -inf }
 0x1c5   : > { %523 = vmax.xlane.f32.xlu1 %v522_v17 }
 0x1c9   : > { %v650_v18 = vpop.f32.mrf.mxu1 }
 0x1ca   : > { %v653_v19 = vmul.f32 0.35355338, %v650_v18 }
 0x1cc   : > { %v654_v20 = vsel %vm496_vm1, %v653_v19, -inf }
 0x1cd   : > { %655 = vmax.xlane.f32.xlu0 %v654_v20 }
 0x1ce   : > { %v716_v24 = vpop.f32.mrf.mxu0 }
 0x1cf   : > { %v584_v21 = vpop.f32.mrf.mxu3  ;;  %v719_v25 = vmul.f32 0.35355338, %v716_v24 }
 0x1d0   : > { %v587_v22 = vmul.f32 0.35355338, %v584_v21  ;;  %v805_v21 = vlaneseq }
 0x1d1   : > { %v720_v26 = vsel %vm496_vm1, %v719_v25, -inf }
 0x1d2   : > { %v588_v23 = vsel %vm496_vm1, %v587_v22, -inf  ;;  %v2171_v24 = vshrl.u32 %v805_v21, 7 }
 0x1d3   : > { %589 = vmax.xlane.f32.xlu2 %v588_v23 }
 0x1db   : > { %721 = vmax.xlane.f32.xlu2 %v720_v26 }
 0x1e1   : > { %533 = vrot.lane.b32.xlu0 %v2115_v7, %s1906_s11 }
 0x1e9   : > { %731 = vrot.lane.b32.xlu0 %v2115_v7, %s1907_s1 }
 0x238   : > { %v524_v27 = vpop.xlane.xlu1 %523 }
 0x239   : > { %v525_v28 = vsub.f32 %v521_v16, %v524_v27 }
 0x23b   : > { %v526_v29 = vmul.f32 1.442695, %v525_v28 }
 0x23d   : > { %1598 = vpow2.f32 %v526_v29 }
 0x240   : > { %v656_v30 = vpop.xlane.xlu0 %655 }
 0x241   : > { %v657_v31 = vsub.f32 %v653_v19, %v656_v30 }
 0x243   : > { %v1599_v32 = vpop.eup %1598  ;;  %v658_v33 = vmul.f32 1.442695, %v657_v31 }
 0x244   : > { %v528_v34 = vsel %vm496_vm1, %v1599_v32, 0.0 }
 0x245   : > { %1600 = vpow2.f32 %v658_v33  ;;  %529 = vadd.xlane.f32.xlu1 %v528_v34 }
 0x246   : > { %v590_v35 = vpop.xlane.xlu2 %589 }
 0x247   : > { %v591_v40 = vsub.f32 %v587_v22, %v590_v35 }
 0x249   : > { %v592_v43 = vmul.f32 1.442695, %v591_v40 }
 0x24b   : > { %v1601_v36 = vpop.eup %1600 }
 0x24c   : > { %v660_v37 = vsel %vm496_vm1, %v1601_v36, 0.0 }
 0x24d   : > { %661 = vadd.xlane.f32.xlu1 %v660_v37 }
 0x24e   : > { %v722_v38 = vpop.xlane.xlu2 %721 }
 0x24f   : > { %v723_v39 = vsub.f32 %v719_v25, %v722_v38 }
 0x251   : > { %v724_v41 = vmul.f32 1.442695, %v723_v39 }
 0x253   : > { %1602 = vpow2.f32 %v724_v41  ;;  %v534_v42 = vpop.permute.xlu0 %533 }
 0x254   : > { %554 = vmatpush.msra.mxu2 %v534_v42  ;;  %1604 = vpow2.f32 %v592_v43 }
 0x259   : > { %v1603_v44 = vpop.eup %1602 }
 0x25a   : > { %v726_v45 = vsel %vm496_vm1, %v1603_v44, 0.0  ;;  %v1605_v46 = vpop.eup %1604 }
 0x25b   : > { %727 = vadd.xlane.f32.xlu2 %v726_v45  ;;  %v594_v47 = vsel %vm496_vm1, %v1605_v46, 0.0  ;;  %v732_v55 = vpop.permute.xlu0 %731 }
 0x263   : > { %595 = vadd.xlane.f32.xlu2 %v594_v47 }
 0x266   : > { %599 = vrot.lane.b32.xlu1 %v2115_v7, %s1908_s26 }
 0x27b   : > { %665 = vrot.lane.b32.xlu2 %v2115_v7, %s1909_s5  ;;  %v774_v7 = vld [vmem:[#allocation7] sm:$0xff] }
 0x27c   : > { %800 = vmatpush.msra.mxu1 %v774_v7  ;;  %v909_v7 = vld [vmem:[#allocation8 + $0x18] sm:$0xff] }
 0x2b8   : > { %v530_v48 = vpop.xlane.xlu1 %529 }
 0x2b9   : > { %1606 = vrcp.f32 %v530_v48 }
 0x2bf   : > { %v1607_v49 = vpop.eup %1606 }
 0x2c0   : > { %v532_v50 = vmul.f32 %v1607_v49, %v1599_v32  ;;  %v662_v52 = vpop.xlane.xlu1 %661 }
 0x2c1   : > { %1608 = vrcp.f32 %v662_v52 }
 0x2c2   : > { %1447 = vmatmul.msk.f32.vlgmr.msra.gmra.mxu2 %vm496_vm1, %v532_v50 }
 0x2c7   : > { %v1609_v56 = vpop.eup %1608 }
 0x2c8   : > { %v664_v60 = vmul.f32 %v1609_v56, %v1601_v36 }
 0x2ce   : > { %v728_v51 = vpop.xlane.xlu2 %727 }
 0x2d6   : > { %v596_v53 = vpop.xlane.xlu2 %595 }
 0x2d7   : > { %1610 = vrcp.f32 %v596_v53 }
 0x2d8   : > { %v600_v54 = vpop.permute.xlu1 %599  ;;  %1612 = vrcp.f32 %v728_v51 }
 0x2d9   : > { %620 = vmatpush.msrb.mxu2 %v600_v54 }
 0x2db   : > { %752 = vmatpush.msra.mxu2 %v732_v55 }
 0x2dd   : > { %v1611_v57 = vpop.eup %1610 }
 0x2de   : > { %v666_v58 = vpop.permute.xlu2 %665  ;;  %v598_v59 = vmul.f32 %v1611_v57, %v1605_v46  ;;  %v1613_v61 = vpop.eup %1612 }
 0x2df   : > { %686 = vmatpush.msrb.mxu3 %v666_v58  ;;  %v730_v62 = vmul.f32 %v1613_v61, %v1603_v44 }
 0x2e0   : > { %1450 = vmatmul.msk.f32.vlgmr.msrb.gmra.mxu2 %vm496_vm1, %v598_v59  ;;  %1453 = vmatmul.msk.f32.vlgmr.msrb.gmra.mxu3 %vm496_vm1, %v664_v60 }
 0x2e1   : > { %929 = vmatpush.msra.mxu3 %v909_v7 }
 0x2e8   : > { %1456 = vmatmul.msk.f32.vlgmr.msra.gmra.mxu2 %vm496_vm1, %v730_v62 }
 0x345   : > { %v556_v63 = vpop.f32.mrf.mxu2 }
 0x363   : > { %v622_v0 = vpop.f32.mrf.mxu2  ;;  %v688_v1 = vpop.f32.mrf.mxu3 }
 0x364   : > { %762 = vrot.lane.b32.xlu1 %v688_v1, %s1910_s3  ;;  %758 = vrot.lane.b32.xlu0 %v622_v0, %s2306_s7 }
 0x36b   : > { %v754_v2 = vpop.f32.mrf.mxu2 }
 0x36c   : > { %766 = vrot.lane.b32.xlu0 %v754_v2, %s2305_s24 }
 0x3d6   : > { %v759_v8 = vpop.permute.xlu0 %758  ;;  %v763_v9 = vpop.permute.xlu1 %762 }
 0x3d7   : > { %v769_v10 = vsel %vm496_vm1, %v556_v63, %v759_v8  ;;  %v908_v8 = vld [vmem:[#allocation8 + $0x10] sm:$0xff] }
 0x3d8   : > { %v771_v11 = vsel %vm770_vm2, %v769_v10, %v763_v9  ;;  %v907_v10 = vld [vmem:[#allocation8 + $0x8] sm:$0xff]  ;;  %930 = vmatpush.msra.mxu3 %v908_v8 }
 0x3da   : > { %931 = vmatpush.msra.mxu3 %v907_v10 }
 0x3de   : > { %v767_v12 = vpop.permute.xlu0 %766 }
 0x3df   : > { %v773_v13 = vsel %vm772_vm3, %v771_v11, %v767_v12  ;;  %v906_v12 = vld [vmem:[#allocation8] sm:$0xff] }
 0x3e0   : > { %1457 = vmatmul.msk.f32.vlgmr.msra.gmra.mxu1 %vm469_vm0, %v773_v13  ;;  %932 = vmatpush.msra.mxu3 %v906_v12 }
 0x45d   : > { %v802_v15 = vpop.f32.mrf.mxu1 }
 0x45e   : > { %v803_v16 = vadd.f32 %v1596_v14, %v802_v15 }
 0x460   : > { %v807_v17 = vsel %vm469_vm0, %v803_v16, -inf }
 0x461   : > { %v808_v18 = vrot.slane %v807_v17, 4 }
 0x463   : > { %v809_v19 = vmax.f32 %v807_v17, %v808_v18 }
 0x465   : > { %v810_v20 = vrot.slane %v809_v19, 2 }
 0x467   : > { %v811_v22 = vmax.f32 %v809_v19, %v810_v20 }
 0x469   : > { %v812_v23 = vrot.slane %v811_v22, 1 }
 0x46b   : > { %v813_v25 = vmax.f32 %v811_v22, %v812_v23 }
 0x46d   : > { %vm814_vm4 = vcmp.eq.f32.partialorder %v803_v16, %v813_v25 }
 0x46e   : > { %v815_v26 = vsel %vm814_vm4, %v2171_v24, 8 }
 0x46f   : > { %v816_v27 = vsel %vm469_vm0, %v815_v26, 2147483647 }
 0x470   : > { %v817_v28 = vrot.slane %v816_v27, 4 }
 0x472   : > { %vm818_vm5 = vcmp.lt.s32.totalorder %v816_v27, %v817_v28 }
 0x473   : > { %v819_v29 = vsel %vm818_vm5, %v816_v27, %v817_v28 }
 0x474   : > { %v820_v30 = vrot.slane %v819_v29, 2 }
 0x476   : > { %vm821_vm6 = vcmp.lt.s32.totalorder %v819_v29, %v820_v30 }
 0x477   : > { %v822_v31 = vsel %vm821_vm6, %v819_v29, %v820_v30 }
 0x478   : > { %v823_v32 = vrot.slane %v822_v31, 1 }
 0x47a   : > { %vm824_vm7 = vcmp.lt.s32.totalorder %v822_v31, %v823_v32 }
 0x47b   : > { %v825_v33 = vsel %vm824_vm7, %v822_v31, %v823_v32 }
 0x47c   : > { %vm826_vm8 = vcmp.eq.s32.totalorder %v2171_v24, %v825_v33 }
 0x47d   : > { %v827_v34 = vsel %vm826_vm8, -inf, %v803_v16 }
 0x47e   : > { %v828_v35 = vsel %vm469_vm0, %v827_v34, -inf }
 0x47f   : > { %v829_v36 = vrot.slane %v828_v35, 4 }
 0x481   : > { %v830_v37 = vmax.f32 %v828_v35, %v829_v36 }
 0x483   : > { %v831_v38 = vrot.slane %v830_v37, 2 }
 0x485   : > { %v832_v39 = vmax.f32 %v830_v37, %v831_v38 }
 0x487   : > { %v833_v40 = vrot.slane %v832_v39, 1 }
 0x489   : > { %v834_v41 = vmax.f32 %v832_v39, %v833_v40 }
 0x48b   : > { %vm835_vm10 = vcmp.eq.f32.partialorder %v827_v34, %v834_v41  ;;  %v2177_v42 = vsel %vm898_vm9, %v813_v25, %v834_v41 }
 0x48c   : > { %v836_v43 = vsel %vm835_vm10, %v2171_v24, 8 }
 0x48d   : > { %v837_v44 = vsel %vm469_vm0, %v836_v43, 2147483647 }
 0x48e   : > { %v838_v45 = vrot.slane %v837_v44, 4 }
 0x490   : > { %vm839_vm11 = vcmp.lt.s32.totalorder %v837_v44, %v838_v45 }
 0x491   : > { %v840_v46 = vsel %vm839_vm11, %v837_v44, %v838_v45 }
 0x492   : > { %v841_v47 = vrot.slane %v840_v46, 2 }
 0x494   : > { %vm842_vm12 = vcmp.lt.s32.totalorder %v840_v46, %v841_v47 }
 0x495   : > { %v843_v48 = vsel %vm842_vm12, %v840_v46, %v841_v47 }
 0x496   : > { %v844_v49 = vrot.slane %v843_v48, 1 }
 0x498   : > { %vm845_vm13 = vcmp.lt.s32.totalorder %v843_v48, %v844_v49 }
 0x499   : > { %v846_v50 = vsel %vm845_vm13, %v843_v48, %v844_v49  ;;  %vm900_vm13 = vcmask 1041408  }
 0x49a   : > { %vm847_vm14 = vcmp.eq.s32.totalorder %v2171_v24, %v846_v50 }
 0x49b   : > { %v848_v51 = vsel %vm847_vm14, -inf, %v827_v34  ;;  %vm902_vm14 = vcmask 1042432  }
 0x49c   : > { %v849_v52 = vsel %vm469_vm0, %v848_v51, -inf }
 0x49d   : > { %v850_v53 = vrot.slane %v849_v52, 4 }
 0x49f   : > { %v851_v54 = vmax.f32 %v849_v52, %v850_v53 }
 0x4a1   : > { %v852_v55 = vrot.slane %v851_v54, 2 }
 0x4a3   : > { %v853_v56 = vmax.f32 %v851_v54, %v852_v55 }
 0x4a5   : > { %v854_v57 = vrot.slane %v853_v56, 1 }
 0x4a7   : > { %v855_v58 = vmax.f32 %v853_v56, %v854_v57 }
 0x4a9   : > { %vm856_vm15 = vcmp.eq.f32.partialorder %v848_v51, %v855_v58  ;;  %v901_v33 = vsel %vm900_vm13, %v2177_v42, %v855_v58 }
 0x4aa   : > { %v857_v59 = vsel %vm856_vm15, %v2171_v24, 8  ;;  %vm904_vm15 = vcmask 1043456  }
 0x4ab   : > { %v858_v60 = vsel %vm469_vm0, %v857_v59, 2147483647 }
 0x4ac   : > { %v859_v61 = vrot.slane %v858_v60, 4 }
 0x4ae   : > { %vm860_vm4 = vcmp.lt.s32.totalorder %v858_v60, %v859_v61 }
 0x4af   : > { %v861_v62 = vsel %vm860_vm4, %v858_v60, %v859_v61  ;;  %vm965_vm4 = vcmask 36864  }
 0x4b0   : > { %v862_v63 = vrot.slane %v861_v62, 2 }
 0x4b2   : > { %vm863_vm5 = vcmp.lt.s32.totalorder %v861_v62, %v862_v63 }
 0x4b3   : > { %v864_v0 = vsel %vm863_vm5, %v861_v62, %v862_v63  ;;  %vm983_vm5 = vcmask 1044480  }
 0x4b4   : > { %v865_v1 = vrot.slane %v864_v0, 1 }
 0x4b6   : > { %vm866_vm6 = vcmp.lt.s32.totalorder %v864_v0, %v865_v1 }
 0x4b7   : > { %v867_v2 = vsel %vm866_vm6, %v864_v0, %v865_v1  ;;  %vm979_vm6 = vcmask 39936  }
 0x4b8   : > { %vm868_vm7 = vcmp.eq.s32.totalorder %v2171_v24, %v867_v2 }
 0x4b9   : > { %v869_v3 = vsel %vm868_vm7, -inf, %v848_v51  ;;  %vm1222_vm7 = vcmask 258048  }
 0x4ba   : > { %v870_v5 = vsel %vm469_vm0, %v869_v3, -inf }
 0x4bb   : > { %v871_v6 = vrot.slane %v870_v5, 4 }
 0x4bd   : > { %v872_v9 = vmax.f32 %v870_v5, %v871_v6 }
 0x4bf   : > { %v873_v11 = vrot.slane %v872_v9, 2 }
 0x4c1   : > { %v874_v13 = vmax.f32 %v872_v9, %v873_v11 }
 0x4c3   : > { %v875_v14 = vrot.slane %v874_v13, 1 }
 0x4c5   : > { %v876_v15 = vmax.f32 %v874_v13, %v875_v14 }
 0x4c7   : > { %vm877_vm8 = vcmp.eq.f32.partialorder %v869_v3, %v876_v15  ;;  %v903_v34 = vsel %vm902_vm14, %v901_v33, %v876_v15 }
 0x4c8   : > { %v878_v16 = vsel %vm877_vm8, %v2171_v24, 8 }
 0x4c9   : > { %v879_v17 = vsel %vm469_vm0, %v878_v16, 2147483647 }
 0x4ca   : > { %v880_v18 = vrot.slane %v879_v17, 4 }
 0x4cc   : > { %vm881_vm9 = vcmp.lt.s32.totalorder %v879_v17, %v880_v18 }
 0x4cd   : > { %v882_v19 = vsel %vm881_vm9, %v879_v17, %v880_v18 }
 0x4ce   : > { %v883_v20 = vrot.slane %v882_v19, 2 }
 0x4d0   : > { %vm884_vm10 = vcmp.lt.s32.totalorder %v882_v19, %v883_v20 }
 0x4d1   : > { %v885_v21 = vsel %vm884_vm10, %v882_v19, %v883_v20 }
 0x4d2   : > { %v886_v22 = vrot.slane %v885_v21, 1 }
 0x4d4   : > { %vm887_vm11 = vcmp.lt.s32.totalorder %v885_v21, %v886_v22 }
 0x4d5   : > { %v888_v23 = vsel %vm887_vm11, %v885_v21, %v886_v22 }
 0x4d6   : > { %vm889_vm12 = vcmp.eq.s32.totalorder %v2171_v24, %v888_v23  ;;  %v1597_v24 = vld [vmem:[%s2299_s6] ss:$0 sm:$0xff] }
 0x4d7   : > { %v890_v25 = vsel %vm889_vm12, -inf, %v869_v3 }
 0x4d8   : > { %v891_v26 = vsel %vm469_vm0, %v890_v25, -inf }
 0x4d9   : > { %v892_v27 = vrot.slane %v891_v26, 4 }
 0x4db   : > { %v893_v28 = vmax.f32 %v891_v26, %v892_v27 }
 0x4dd   : > { %v894_v29 = vrot.slane %v893_v28, 2 }
 0x4df   : > { %v895_v30 = vmax.f32 %v893_v28, %v894_v29 }
 0x4e1   : > { %v896_v31 = vrot.slane %v895_v30, 1 }
 0x4e3   : > { %v897_v32 = vmax.f32 %v895_v30, %v896_v31 }
 0x4e5   : > { %v905_v35 = vsel %vm904_vm15, %v903_v34, %v897_v32 }
 0x4e6   : > { %1458 = vmatmul.msk.f32.vlgmr.msra.gmra.mxu3 %vm469_vm0, %v905_v35  ;;  %v1269_v35 = vld [vmem:[#allocation11 + $0x18] sm:$0xff] }
 0x569   : > { %v934_v36 = vpop.f32.mrf.mxu3 }
 0x56a   : > { %v2196_v37 = vadd.f32 %v1597_v24, %v934_v36  ;;  %v1241_v24 = vld [vmem:[#allocation10 + $0x18] sm:$0xff]  ;;  %v1268_v36 = vld [vmem:[#allocation11 + $0x10] sm:$0xff] }
 0x56c   : > { %1006 = vrot.lane.b32.xlu0 %v2196_v37, %s1900_s27  ;;  %1008 = vrot.lane.b32.xlu1 %v2196_v37, %s1904_s29  ;;  %s2322_s27 = smov 24  }
 0x56d   : > { %938 = vrot.lane.b32.xlu2 %v2196_v37, %s1901_s12  ;;  %s1478_s12 = sshll.u32 %s1993_s20, 3  ;;  %s1293_s20 = scalar_lea.sflag [#allocation4], %s2086_s18 }
 0x574   : > { %1073 = vrot.lane.b32.xlu0 %v2196_v37, %s1902_s28  ;;  %1142 = vrot.lane.b32.xlu1 %v2196_v37, %s1899_s21  ;;  %s2321_s21 = smov 8  }
 0x575   : > { %1075 = vrot.lane.b32.xlu2 %v2196_v37, %s1903_s30 }
 0x57d   : > { %1140 = vrot.lane.b32.xlu2 %v2196_v37, %s1905_s23 }
 0x5c7   : > { %v939_v38 = vpop.permute.xlu2 %938 }
 0x5c8   : > { %1459 = vmatpush.xpose.msk.msra.mxu0 %vm496_vm1, %v939_v38  ;;  %v1267_v38 = vld [vmem:[#allocation11 + $0x8] sm:$0xff] }
 0x5cb   : > { %1460 = vmatmul.msk.f32.vlgmr.msra.gmra.mxu0 %vm496_vm1, %v2196_v37 }
 0x5cf   : > { %v1076_v39 = vpop.permute.xlu2 %1075 }
 0x5d0   : > { %1467 = vmatpush.xpose.msk.msrb.mxu0 %vm496_vm1, %v1076_v39  ;;  %v1239_v39 = vld [vmem:[#allocation10 + $0x8] sm:$0xff] }
 0x5d4   : > { %1258 = vmatpush.msra.mxu0 %v1241_v24 }
 0x5d7   : > { %v1141_v44 = vpop.permute.xlu2 %1140 }
 0x5de   : > { %v1007_v40 = vpop.permute.xlu0 %1006  ;;  %v1009_v41 = vpop.permute.xlu1 %1008 }
 0x5df   : > { %1463 = vmatpush.xpose.msk.msrb.mxu1 %vm496_vm1, %v1009_v41  ;;  %v1238_v41 = vld [vmem:[#allocation10] sm:$0xff] }
 0x5e2   : > { %1464 = vmatmul.msk.f32.vlgmr.msrb.gmra.mxu1 %vm496_vm1, %v1007_v40  ;;  %v1266_v40 = vld [vmem:[#allocation11] sm:$0xff] }
 0x5e6   : > { %v1074_v42 = vpop.permute.xlu0 %1073  ;;  %v1143_v43 = vpop.permute.xlu1 %1142 }
 0x5e7   : > { %1468 = vmatmul.msk.f32.vlgmr.msrb.gmra.mxu0 %vm496_vm1, %v1074_v42  ;;  %1471 = vmatpush.xpose.msk.msra.mxu1 %vm496_vm1, %v1143_v43  ;;  %v1913_v42 = vmov 5.0  }
 0x5ea   : > { %1472 = vmatmul.msk.f32.vlgmr.msra.gmra.mxu1 %vm496_vm1, %v1141_v44 }
 0x648   : > { %v961_v45 = vpop.f32.mrf.mxu0 }
 0x649   : > { %v964_v46 = vmul.f32 0.35355338, %v961_v45 }
 0x64b   : > { %v966_v47 = vsel %vm965_vm4, %v964_v46, -inf }
 0x64c   : > { %967 = vmax.xlane.f32.xlu1 %v966_v47 }
 0x65f   : > { %v1031_v48 = vpop.f32.mrf.mxu1 }
 0x660   : > { %v1034_v49 = vmul.f32 0.35355338, %v1031_v48 }
 0x662   : > { %v1035_v50 = vsel %vm965_vm4, %v1034_v49, -inf }
 0x663   : > { %1036 = vmax.xlane.f32.xlu0 %v1035_v50 }
 0x664   : > { %v1098_v51 = vpop.f32.mrf.mxu0 }
 0x665   : > { %v1101_v52 = vmul.f32 0.35355338, %v1098_v51 }
 0x667   : > { %v1165_v53 = vpop.f32.mrf.mxu1  ;;  %v1102_v54 = vsel %vm965_vm4, %v1101_v52, -inf }
 0x668   : > { %v1168_v55 = vmul.f32 0.35355338, %v1165_v53  ;;  %1103 = vmax.xlane.f32.xlu2 %v1102_v54 }
 0x66a   : > { %v1169_v56 = vsel %vm965_vm4, %v1168_v55, -inf }
 0x66b   : > { %1170 = vmax.xlane.f32.xlu1 %v1169_v56 }
 0x677   : > { %977 = vrot.lane.b32.xlu0 %v2196_v37, %s1906_s11  ;;  %s1303_s11 = scalar_lea.hbm %s2303_s10, %s1478_s12  ;;  %s1832_s12 = scalar_lea.hbm %s2303_s10, 16 }
 0x6bf   : > { %v968_v57 = vpop.xlane.xlu1 %967 }
 0x6c0   : > { %v969_v58 = vsub.f32 %v964_v46, %v968_v57 }
 0x6c2   : > { %v970_v59 = vmul.f32 1.442695, %v969_v58 }
 0x6c4   : > { %1614 = vpow2.f32 %v970_v59 }
 0x6ca   : > { %v1615_v60 = vpop.eup %1614 }
 0x6cb   : > { %v972_v61 = vsel %vm965_vm4, %v1615_v60, 0.0 }
 0x6cc   : > { %973 = vadd.xlane.f32.xlu0 %v972_v61 }
 0x6d6   : > { %v1037_v62 = vpop.xlane.xlu0 %1036 }
 0x6d7   : > { %v1038_v63 = vsub.f32 %v1034_v49, %v1037_v62  ;;  %v1242_v62 = vld [vmem:[%s2302_s9] sm:$0x1] }
 0x6d9   : > { %v1039_v0 = vmul.f32 1.442695, %v1038_v63 }
 0x6db   : > { %1616 = vpow2.f32 %v1039_v0  ;;  %v1104_v1 = vpop.xlane.xlu2 %1103 }
 0x6dc   : > { %v1105_v2 = vsub.f32 %v1101_v52, %v1104_v1 }
 0x6de   : > { %v1106_v3 = vmul.f32 1.442695, %v1105_v2  ;;  %v1171_v5 = vpop.xlane.xlu1 %1170 }
 0x6df   : > { %v1172_v6 = vsub.f32 %v1168_v55, %v1171_v5 }
 0x6e0   : > { %1618 = vpow2.f32 %v1106_v3  ;;  %1180 = vrot.lane.b32.xlu0 %v2196_v37, %s1907_s1  ;;  %s2323_s1 = sshll.u32 %s2086_s18, 3 }
 0x6e1   : > { %v1617_v7 = vpop.eup %1616  ;;  %v1173_v8 = vmul.f32 1.442695, %v1172_v6 }
 0x6e2   : > { %v1041_v9 = vsel %vm965_vm4, %v1617_v7, 0.0 }
 0x6e3   : > { %1620 = vpow2.f32 %v1173_v8  ;;  %1042 = vadd.xlane.f32.xlu2 %v1041_v9 }
 0x6e6   : > { %v1619_v10 = vpop.eup %1618 }
 0x6e7   : > { %v1108_v11 = vsel %vm965_vm4, %v1619_v10, 0.0 }
 0x6e8   : > { %1109 = vadd.xlane.f32.xlu1 %v1108_v11 }
 0x6e9   : > { %v1621_v12 = vpop.eup %1620  ;;  %v978_v13 = vpop.permute.xlu0 %977 }
 0x6ea   : > { %1461 = vmatpush.msk.msrb.mxu2 %vm983_vm5, %v978_v13  ;;  %v1175_v14 = vsel %vm965_vm4, %v1621_v12, 0.0 }
 0x6eb   : > { %1176 = vadd.xlane.f32.xlu2 %v1175_v14 }
 0x701   : > { %1046 = vrot.lane.b32.xlu1 %v2196_v37, %s1908_s26  ;;  %s459_s26 = scalar_lea.vmem [#allocation13], %s2323_s1 }
 0x703   : > { %1113 = vrot.lane.b32.xlu2 %v2196_v37, %s1909_s5  ;;  %v1240_v37 = vld [vmem:[#allocation10 + $0x10] sm:$0xff]  ;;  %s1305_s5 = sshll.u32 %s459_s26, 4  ;;  %s1306_s5 = int_to_ptr.vmem [resolvable:$true] %s1305_s5 }
 0x704   : > { %1259 = vmatpush.msra.mxu0 %v1240_v37 }
 0x706   : > { %1260 = vmatpush.msra.mxu0 %v1239_v39 }
 0x708   : > { %1261 = vmatpush.msra.mxu0 %v1238_v41 }
 0x73f   : > { %v974_v15 = vpop.xlane.xlu0 %973 }
 0x740   : > { %1622 = vrcp.f32 %v974_v15 }
 0x746   : > { %v1623_v16 = vpop.eup %1622 }
 0x747   : > { %v976_v17 = vmul.f32 %v1623_v16, %v1615_v60 }
 0x749   : > { %1462 = vmatmul.msk.f32.vlgmr.msrb.gmra.mxu2 %vm979_vm6, %v976_v17 }
 0x752   : > { %v1181_v28 = vpop.permute.xlu0 %1180 }
 0x756   : > { %v1043_v18 = vpop.xlane.xlu2 %1042 }
 0x75b   : > { %v1110_v19 = vpop.xlane.xlu1 %1109 }
 0x75c   : > { %1624 = vrcp.f32 %v1110_v19 }
 0x75d   : > { %1626 = vrcp.f32 %v1043_v18 }
 0x75e   : > { %v1177_v20 = vpop.xlane.xlu2 %1176 }
 0x75f   : > { %1628 = vrcp.f32 %v1177_v20 }
 0x760   : > { %1630 = vrcp.f32 %v1913_v42 }
 0x762   : > { %v1625_v21 = vpop.eup %1624 }
 0x763   : > { %v1112_v22 = vmul.f32 %v1625_v21, %v1619_v10  ;;  %v1627_v25 = vpop.eup %1626 }
 0x764   : > { %v1045_v26 = vmul.f32 %v1627_v25, %v1617_v7 }
 0x765   : > { %v1629_v29 = vpop.eup %1628 }
 0x766   : > { %v1114_v23 = vpop.permute.xlu2 %1113  ;;  %v1179_v30 = vmul.f32 %v1629_v29, %v1621_v12  ;;  %v1631_v43 = vpop.eup %1630 }
 0x767   : > { %1469 = vmatpush.msk.msra.mxu2 %vm983_vm5, %v1114_v23  ;;  %v1231_v44 = vmul.f32 5.0, %v1631_v43  ;;  %vm1235_vm8 = vweird.f32 %v1631_v43 }
 0x768   : > { %1470 = vmatmul.msk.f32.vlgmr.msra.gmra.mxu2 %vm979_vm6, %v1112_v22 }
 0x769   : > { %1283 = vmatpush.msrb.mxu2 %v1269_v35  ;;  %v1232_v50 = vsub.f32 1.0, %v1231_v44 }
 0x76b   : > { %1284 = vmatpush.msrb.mxu2 %v1268_v36 }
 0x76d   : > { %1285 = vmatpush.msrb.mxu2 %v1267_v38 }
 0x76f   : > { %1286 = vmatpush.msrb.mxu2 %v1266_v40 }
 0x770   : > { %1476 = vmatmul.msk.f32.vlgmr.msrb.gmra.mxu2 %vm469_vm0, %v2108_v4  ;;  %v1233_v4 = vmul.f32 %v1631_v43, %v1232_v50 }
 0x772   : > { %v1234_v56 = vadd.f32 %v1631_v43, %v1233_v4 }
 0x773   : > { %v1047_v27 = vpop.permute.xlu1 %1046 }
 0x774   : > { %1465 = vmatpush.msk.msrb.mxu3 %vm983_vm5, %v1047_v27  ;;  %v1236_v59 = vsel %vm1235_vm8, %v1631_v43, %v1234_v56 }
 0x775   : > { %1466 = vmatmul.msk.f32.vlgmr.msrb.gmra.mxu3 %vm979_vm6, %v1045_v26 }
 0x776   : > { %1473 = vmatpush.msk.msra.mxu3 %vm983_vm5, %v1181_v28 }
 0x77d   : > { %1474 = vmatmul.msk.f32.vlgmr.msra.gmra.mxu3 %vm979_vm6, %v1179_v30 }
 0x7cc   : > { %v1003_v31 = vpop.f32.mrf.mxu2 }
 0x7eb   : > { %v1137_v32 = vpop.f32.mrf.mxu2 }
 0x7ec   : > { %1212 = vrot.lane.b32.xlu1 %v1137_v32, %s1910_s3  ;;  %s1307_s3 = sshll.u32 %s1303_s11, 4  ;;  %s1308_s3 = int_to_ptr.hbm [resolvable:$true] %s1307_s3 }
 0x7ed   : > { %s1826_s24 = sshra.s32 %s1308_s3, 4  ;;  %s1827_s24 = int_to_ptr.hbm [resolvable:$true] %s1826_s24 }
 0x7ee   : > { %s1828_s7 = scalar_lea.hbm %s1827_s24, 8  ;;  %p1833_p12 = scmp.lt.s32.totalorder %s1827_s24, %s2303_s10 }
 0x7ef   : > { %p1829_p1 = scmp.ne.s32.totalorder %s1827_s24, %s1828_s7  ;;  %p1834_p8 = scmp.lt.s32.totalorder %s1832_s12, %s1828_s7 }
 0x7f1   : > { %p1830_p3 = pnand %p1829_p1, %p2055_p13  ;;  %p1835_p7 = por %p1834_p8, %p1833_p12 }
 0x7f3   : > { %v1288_v1 = vpop.f32.mrf.mxu2  ;;  %p1831_p5 = pneg %p1830_p3 }
 0x7f5   : > { %p1836_p9 = pnand %p1835_p7, %p1831_p5 }
 0x7f8   : > { %v1070_v33 = vpop.f32.mrf.mxu3 }
 0x7f9   : > { %1208 = vrot.lane.b32.xlu0 %v1070_v33, %s2321_s21 }
 0x800   : > { %v1204_v34 = vpop.f32.mrf.mxu3 }
 0x801   : > { %1216 = vrot.lane.b32.xlu2 %v1204_v34, %s2322_s27 }
 0x85b   : > { %v1217_v48 = vpop.permute.xlu2 %1216 }
 0x85e   : > { %v1213_v46 = vpop.permute.xlu1 %1212 }
 0x86b   : > { %v1209_v45 = vpop.permute.xlu0 %1208 }
 0x86c   : > { %v1219_v47 = vsel %vm496_vm1, %v1003_v31, %v1209_v45 }
 0x86d   : > { %v1220_v49 = vsel %vm770_vm2, %v1219_v47, %v1213_v46 }
 0x86e   : > { %v1221_v51 = vsel %vm772_vm3, %v1220_v49, %v1217_v48 }
 0x86f   : > { %v1223_v52 = vsel %vm1222_vm7, %v1221_v51, 0.0 }
 0x870   : > { %v1224_v53 = vrot.slane %v1223_v52, 4 }
 0x872   : > { %v1225_v54 = vadd.f32 %v1224_v53, %v1223_v52 }
 0x874   : > { %v1226_v55 = vrot.slane %v1225_v54, 2 }
 0x876   : > { %v1227_v57 = vadd.f32 %v1226_v55, %v1225_v54 }
 0x878   : > { %v1228_v58 = vrot.slane %v1227_v57, 1 }
 0x87a   : > { %v1229_v60 = vadd.f32 %v1228_v58, %v1227_v57 }
 0x87c   : > { %v1237_v61 = vmul.f32 %v1236_v59, %v1229_v60 }
 0x87e   : > { %1475 = vmatmul.msk.f32.vlgmr.msra.gmra.mxu0 %vm469_vm0, %v1237_v61 }
 0x8fb   : > { %v1263_v63 = vpop.f32.mrf.mxu0 }
 0x8fc   : > { %v1264_v0 = vadd.f32 %v1263_v63, %v1242_v62 }
 0x8fe   : > { %v1270_v2 = vperm.slane %v1264_v0, 0 }
 0x900   : > { %v1289_v3 = vadd.f32 %v1288_v1, %v1270_v2 }
 0x902   : > { %1291 = vst.msk [vmem:[%s459_s26] sm:$0xff] %vm469_vm0, %v1289_v3 }
 0x903   : > { %1839 = shalt.err (!%p1836_p9)
}
 0x904   : > { %1503 = dma.vmem_to_hbm [thread:$0]  (%p2055_p13), %s1306_s5, 128, %s1308_s3, %s1293_s20  }
 0x905 PF: > { %s1319_s18 = sand.u32 1, %s1878_s13   ;;  %p2324_p10 = scmp.ge.s32.totalorder %s1890_s16, 2 }
 0x906   : > { %s1320_s29 = scalar_lea.sflag [#allocation4], %s1319_s18 }
 0x907   : > { %p1526_p11 = pnand %p2324_p10, %p2060_p4 }
 0x909   : > { %p1527_p0 = pneg %p1526_p11 }
 0x90b   : > { %1873 = dma.done.wait (%p1527_p0), %s1320_s29, 128  }
 0x90c   : > { %1875 = vsyncadd (%p1527_p0), %s1320_s29, 4294967168  ;;  %p26_p2 = scmp.ge.s32.totalorder %s2035_s22, 4   ;;  %s2325_s13 = smov %s1882_s14 }
 0x90d   : > { %s2326_s14 = smov %s1886_s15  ;;  %s2327_s15 = smov %s2047_s25 }
 0x90e   : > { %s2328_s16 = smov %s2035_s22  ;;  %28 = sbr.rel (!%p26_p2) target bundleno = 13 (0xd), region = 125 }
 0x913   :  { %1326 = vsyncpa [#allocation3], 1 }
 0x914   :  { %1328 = vsyncpa [#allocation3 + $0x1], 1 }
 0x915   :  { %1329 = vsyncpa [#allocation6], 1 }
 0x916   :  { %1330 = vsyncpa [#allocation9], 1 }
 0x917   :  { %1331 = vsyncpa [#allocation12], 1 }
 0x918   :  { %1332 = vsyncpa [#allocation4], 1 }
 0x919   :  { %1334 = vsyncpa [#allocation4 + $0x1], 1 }

</bundles_post_ra>
